<compile_context>
chip_gen: v7x
topology: tpu7x:2x2x1
jax: 0.10.0
libtpu: 0.0.40
codegen_flags: <defaults>
</compile_context>

<pallas_src>
import functools

import jax
import jax.numpy as jnp
from jax.experimental import pallas as pl
from jax.experimental.pallas import tpu as pltpu


def _flash_mha_kernel(xq_ref, xkv_ref, wq_ref, wk_ref, wv_ref, wo_ref, bo_ref,
                      o_ref,
                      q_sc, k_sc, v_sc, m_sc, l_sc, acc_sc,
                      *, heads, scale):
    j = pl.program_id(2)

    # ---- init for this q tile: project + scale q into head-major scratch ----
    @pl.when(j == 0)
    def _init():
        xq = xq_ref[0]                                     # (tq, dim) bf16
        for h in range(heads):                             # static unroll; no lane slicing
            qh = jnp.dot(xq, wq_ref[h], preferred_element_type=jnp.float32)
            q_sc[h] = (qh * scale).astype(q_sc.dtype)      # fold softmax scale into q once
        m_sc[...] = jnp.full(m_sc.shape, -jnp.inf, m_sc.dtype)
        l_sc[...] = jnp.zeros(l_sc.shape, l_sc.dtype)
        acc_sc[...] = jnp.zeros(acc_sc.shape, acc_sc.dtype)

    # ---- project this kv tile into head-major scratch ----
    xkv = xkv_ref[0]                                       # (tkv, dim) bf16
    for h in range(heads):
        k_sc[h] = jnp.dot(xkv, wk_ref[h],
                          preferred_element_type=jnp.float32).astype(k_sc.dtype)
        v_sc[h] = jnp.dot(xkv, wv_ref[h],
                          preferred_element_type=jnp.float32).astype(v_sc.dtype)

    # ---- head-batched scores + online softmax update (no k.T, no concat) ----
    s = jnp.einsum('hqd,hkd->hqk', q_sc[...], k_sc[...],
                   preferred_element_type=jnp.float32)     # (heads, tq, tkv) f32
    m_prev = m_sc[...]
    m_new = jnp.maximum(m_prev, jnp.max(s, axis=-1, keepdims=True))
    alpha = jnp.exp(m_prev - m_new)
    p = jnp.exp(s - m_new)
    l_sc[...] = alpha * l_sc[...] + jnp.sum(p, axis=-1, keepdims=True)
    acc_sc[...] = alpha * acc_sc[...] + jnp.einsum(
        'hqk,hkd->hqd', p.astype(v_sc.dtype), v_sc[...],
        preferred_element_type=jnp.float32)
    m_sc[...] = m_new

    # ---- finalize: normalize and apply output projection + bias ----
    @pl.when(j == pl.num_programs(2) - 1)
    def _finalize():
        # Normalize all heads at once; reciprocal runs on the EUP slot.
        inv_l = pl.reciprocal(l_sc[...], approx=True)          # (heads, tq, 1)
        out_all = (acc_sc[...] * inv_l).astype(jnp.bfloat16)   # (heads, tq, dim_head)
        res = jnp.zeros(o_ref.shape[1:], jnp.float32)          # (tq, dim)
        for h in range(heads):
            # sum_h out_h @ W_out[h]  ==  concat_h(out_h) @ W_out   (no concat)
            res = res + jnp.dot(out_all[h], wo_ref[h],
                                preferred_element_type=jnp.float32)
        o_ref[0] = (res + bo_ref[...]).astype(o_ref.dtype)


def _pick_tile(n, target):
    """Largest t <= target with n % t == 0 and t % 8 == 0 (fallback: full n)."""
    if n <= target:
        return n
    for t in range(target, 7, -1):
        if n % t == 0 and t % 8 == 0:
            return t
    return n


def attention_pallas(x, w_qkv, w_out, b_out, *, heads, dim_head,
                     q_block=None, kv_block=None):
    b, n, dim = x.shape
    inner = heads * dim_head
    assert w_qkv.shape == (dim, 3 * inner)
    assert w_out.shape == (inner, dim)
    scale = float(dim_head) ** -0.5

    tq = q_block if q_block is not None else _pick_tile(n, 256)
    tkv = kv_block if kv_block is not None else _pick_tile(n, 512)
    assert n % tq == 0 and n % tkv == 0

    cdt = jnp.bfloat16            # MXU-native operand dtype; accumulation stays f32
    x_c = x.astype(cdt)

    # Per-head weight slabs (pure layout plumbing, done once outside the kernel).
    def split_heads(w):           # (dim, inner) -> (heads, dim, dim_head)
        return jnp.transpose(w.reshape(dim, heads, dim_head), (1, 0, 2)).astype(cdt)

    w_q = split_heads(w_qkv[:, 0 * inner:1 * inner])
    w_k = split_heads(w_qkv[:, 1 * inner:2 * inner])
    w_v = split_heads(w_qkv[:, 2 * inner:3 * inner])
    w_o = w_out.reshape(heads, dim_head, dim).astype(cdt)
    b_o = b_out.reshape(1, dim).astype(jnp.float32)

    grid = (b, n // tq, n // tkv)
    kernel = functools.partial(_flash_mha_kernel, heads=heads, scale=scale)

    # Rough VMEM budget (block double-buffering included) -> explicit limit.
    est = (2 * (tq * dim + tkv * dim) * 2                 # x tiles (bf16, dbl-buffered)
           + 2 * 3 * heads * dim * dim_head * 2           # w_q, w_k, w_v
           + 2 * heads * dim_head * dim * 2               # w_o
           + 2 * dim * 4                                  # bias
           + 2 * tq * dim * x.dtype.itemsize              # output tile
           + heads * tq * dim_head * (2 + 4)              # q scratch + acc scratch
           + 2 * heads * tkv * dim_head * 2               # k, v scratch
           + 2 * heads * tq * 4)                          # m, l scratch
    vmem_limit = int(min(max(2 * est, 16 * 1024 * 1024), 64 * 1024 * 1024))

    flops = int(2 * b * n * dim * inner                         # q projection
                + 2 * b * (n // tq) * n * dim * 2 * inner       # k/v projection (per q tile)
                + 4 * b * heads * n * n * dim_head              # QK^T + attn@V
                + 2 * b * n * inner * dim)                      # output projection
    bytes_accessed = int(b * n * dim * 2 * (1 + n // tq)        # xq + xkv streams (bf16)
                         + (w_q.size + w_k.size + w_v.size + w_o.size) * 2
                         + b_o.size * 4
                         + b * n * dim * x.dtype.itemsize)      # output

    return pl.pallas_call(
        kernel,
        out_shape=jax.ShapeDtypeStruct((b, n, dim), x.dtype),
        grid_spec=pltpu.PrefetchScalarGridSpec(
            num_scalar_prefetch=0,
            grid=grid,
            in_specs=[
                pl.BlockSpec((1, tq, dim), lambda bi, qi, ki: (bi, qi, 0)),    # x rows for q
                pl.BlockSpec((1, tkv, dim), lambda bi, qi, ki: (bi, ki, 0)),   # x rows for k/v
                pl.BlockSpec((heads, dim, dim_head), lambda bi, qi, ki: (0, 0, 0)),  # w_q
                pl.BlockSpec((heads, dim, dim_head), lambda bi, qi, ki: (0, 0, 0)),  # w_k
                pl.BlockSpec((heads, dim, dim_head), lambda bi, qi, ki: (0, 0, 0)),  # w_v
                pl.BlockSpec((heads, dim_head, dim), lambda bi, qi, ki: (0, 0, 0)),  # w_o
                pl.BlockSpec((1, dim), lambda bi, qi, ki: (0, 0)),                   # bias
            ],
            out_specs=pl.BlockSpec((1, tq, dim), lambda bi, qi, ki: (bi, qi, 0)),
            scratch_shapes=[
                pltpu.VMEM((heads, tq, dim_head), jnp.bfloat16),    # q (pre-scaled)
                pltpu.VMEM((heads, tkv, dim_head), jnp.bfloat16),   # k tile
                pltpu.VMEM((heads, tkv, dim_head), jnp.bfloat16),   # v tile
                pltpu.VMEM((heads, tq, 1), jnp.float32),            # running max
                pltpu.VMEM((heads, tq, 1), jnp.float32),            # running denominator
                pltpu.VMEM((heads, tq, dim_head), jnp.float32),     # running numerator
            ]),
        compiler_params=pltpu.CompilerParams(
            dimension_semantics=("parallel", "parallel", "arbitrary"),
            vmem_limit_bytes=vmem_limit),
        cost_estimate=pl.CostEstimate(flops=flops,
                                      transcendentals=int(b * heads * n * n),
                                      bytes_accessed=bytes_accessed),
    )(x_c, x_c, w_q, w_k, w_v, w_o, b_o)


def attention_ref(x, w_qkv, w_out, b_out, *, heads, dim_head):
    """Plain-JAX f32 reference matching the PyTorch forward exactly."""
    b, n, dim = x.shape
    inner = heads * dim_head
    scale = dim_head ** (-0.5)
    qkv = jnp.einsum('bnd,de->bne', x, w_qkv)
    q, k, v = jnp.split(qkv, 3, axis=-1)

    def to_heads(t):
        return t.reshape(b, n, heads, dim_head).transpose(0, 2, 1, 3)

    q, k, v = map(to_heads, (q, k, v))
    dots = jnp.einsum('bhid,bhjd->bhij', q, k) * scale
    attn = jax.nn.softmax(dots, axis=-1)
    out = jnp.einsum('bhij,bhjd->bhid', attn, v)
    out = out.transpose(0, 2, 1, 3).reshape(b, n, inner)
    return jnp.einsum('bne,ed->bnd', out, w_out) + b_out[0]


if __name__ == "__main__":
    def run_case(batch, seq, dim, heads, dim_head, q_block=None, kv_block=None):
        inner = heads * dim_head
        key = jax.random.PRNGKey(0)
        kx, kq, kw, kb = jax.random.split(key, 4)
        x = jax.random.normal(kx, (batch, seq, dim), dtype=jnp.float32)
        # Deterministic synthetic parameters (nn.Linear weights, transposed so the
        # kernel computes x @ W).
        w_qkv = jax.random.normal(kq, (dim, 3 * inner), dtype=jnp.float32) * 0.05
        w_out = jax.random.normal(kw, (inner, dim), dtype=jnp.float32) * 0.05
        b_out = jax.random.normal(kb, (1, dim), dtype=jnp.float32) * 0.05

        out = attention_pallas(x, w_qkv, w_out, b_out, heads=heads,
                               dim_head=dim_head, q_block=q_block, kv_block=kv_block)
        out = jax.block_until_ready(out)

        ref = attention_ref(x, w_qkv, w_out, b_out, heads=heads, dim_head=dim_head)
        assert out.shape == (batch, seq, dim)
        # bf16 operands with f32 accumulation -> compare against the f32 reference
        # with a bf16-appropriate tolerance.
        assert jnp.allclose(out, ref, atol=2e-2, rtol=2e-2), (
            f"mismatch vs reference (max abs err {jnp.max(jnp.abs(out - ref))})")

    # Single-tile case (toy shapes consistent with the module).
    run_case(batch=2, seq=8, dim=32, heads=4, dim_head=8)
    # Multi-tile case: exercises the online-softmax kv loop, q-tile caching and
    # the (batch, q_tile) parallel grid.
    run_case(batch=2, seq=64, dim=32, heads=4, dim_head=8, q_block=32, kv_block=16)

    print("KERNEL_OK")
</pallas_src>

<mosaic_0001>
module attributes {stable_mosaic.version = 11 : i64} {
  func.func @_flash_mha_kernel(%arg0: i32, %arg1: i32, %arg2: i32, %arg3: memref<1x8x32xbf16, #tpu.memory_space<vmem>>, %arg4: memref<1x8x32xbf16, #tpu.memory_space<vmem>>, %arg5: memref<4x32x8xbf16, #tpu.memory_space<vmem>>, %arg6: memref<4x32x8xbf16, #tpu.memory_space<vmem>>, %arg7: memref<4x32x8xbf16, #tpu.memory_space<vmem>>, %arg8: memref<4x8x32xbf16, #tpu.memory_space<vmem>>, %arg9: memref<1x32xf32, #tpu.memory_space<vmem>>, %arg10: memref<1x8x32xf32, #tpu.memory_space<vmem>>, %arg11: memref<4x8x8xbf16, #tpu.memory_space<vmem>>, %arg12: memref<4x8x8xbf16, #tpu.memory_space<vmem>>, %arg13: memref<4x8x8xbf16, #tpu.memory_space<vmem>>, %arg14: memref<4x8x1xf32, #tpu.memory_space<vmem>>, %arg15: memref<4x8x1xf32, #tpu.memory_space<vmem>>, %arg16: memref<4x8x8xf32, #tpu.memory_space<vmem>>) attributes {dimension_semantics = [#tpu.dimension_semantics<parallel>, #tpu.dimension_semantics<parallel>, #tpu.dimension_semantics<arbitrary>], iteration_bounds = array<i64: 2, 1, 1>, scalar_prefetch = 0 : i64, scratch_operands = 6 : i64, tpu.core_type = #tpu.core_type<tc>, window_params = [{transform_indices = @transform_0, window_bounds = array<i64: 1, 8, 32>}, {transform_indices = @transform_1, window_bounds = array<i64: 1, 8, 32>}, {pipeline_mode = #tpu.pipeline_mode<synchronous>, transform_indices = @transform_2, window_bounds = array<i64: 4, 32, 8>}, {pipeline_mode = #tpu.pipeline_mode<synchronous>, transform_indices = @transform_3, window_bounds = array<i64: 4, 32, 8>}, {pipeline_mode = #tpu.pipeline_mode<synchronous>, transform_indices = @transform_4, window_bounds = array<i64: 4, 32, 8>}, {pipeline_mode = #tpu.pipeline_mode<synchronous>, transform_indices = @transform_5, window_bounds = array<i64: 4, 8, 32>}, {pipeline_mode = #tpu.pipeline_mode<synchronous>, transform_indices = @transform_6, window_bounds = array<i64: 1, 32>}, {transform_indices = @transform_7, window_bounds = array<i64: 1, 8, 32>}]} {
    %c0_i32 = arith.constant 0 : i32
    %0 = arith.cmpi eq, %arg2, %c0_i32 : i32
    %1 = arith.extui %0 : i1 to i32
    %c0_i32_0 = arith.constant 0 : i32
    %2 = arith.cmpi ne, %1, %c0_i32_0 : i32
    scf.if %2 {
      %c0_88 = arith.constant 0 : index
      %c0_89 = arith.constant 0 : index
      %c0_90 = arith.constant 0 : index
      %91 = vector.load %arg3[%c0_88, %c0_89, %c0_90] : memref<1x8x32xbf16, #tpu.memory_space<vmem>>, vector<1x8x32xbf16>
      %92 = vector.shape_cast %91 : vector<1x8x32xbf16> to vector<8x32xbf16>
      %c0_91 = arith.constant 0 : index
      %c0_92 = arith.constant 0 : index
      %c0_93 = arith.constant 0 : index
      %93 = vector.load %arg5[%c0_91, %c0_92, %c0_93] : memref<4x32x8xbf16, #tpu.memory_space<vmem>>, vector<1x32x8xbf16>
      %94 = vector.shape_cast %93 : vector<1x32x8xbf16> to vector<32x8xbf16>
      %cst_94 = arith.constant dense<0.000000e+00> : vector<8x8xf32>
      %95 = tpu.matmul %92, %94, %cst_94 {dimension_numbers = #tpu.dot_dimension_numbers<[1], [0], [0], [1], [0, 0, 1, 1], [], []>} : vector<8x32xbf16>, vector<32x8xbf16>, vector<8x8xf32> -> vector<8x8xf32>
      %cst_95 = arith.constant 0.353553385 : f32
      %96 = vector.broadcast %cst_95 : f32 to vector<8x8xf32>
      %97 = arith.mulf %95, %96 : vector<8x8xf32>
      %98 = arith.truncf %97 : vector<8x8xf32> to vector<8x8xbf16>
      %c0_96 = arith.constant 0 : index
      %c0_97 = arith.constant 0 : index
      %c0_98 = arith.constant 0 : index
      %99 = vector.load %arg11[%c0_96, %c0_97, %c0_98] : memref<4x8x8xbf16, #tpu.memory_space<vmem>>, vector<1x8x8xbf16>
      %100 = vector.shape_cast %99 : vector<1x8x8xbf16> to vector<8x8xbf16>
      %101 = vector.shape_cast %98 : vector<8x8xbf16> to vector<1x8x8xbf16>
      tpu.vector_store %arg11[%c0_96, %c0_97, %c0_98], %101 {strides = array<i32>} : memref<4x8x8xbf16, #tpu.memory_space<vmem>>, vector<1x8x8xbf16>,
      %c1_99 = arith.constant 1 : index
      %c0_100 = arith.constant 0 : index
      %c0_101 = arith.constant 0 : index
      %102 = vector.load %arg5[%c1_99, %c0_100, %c0_101] : memref<4x32x8xbf16, #tpu.memory_space<vmem>>, vector<1x32x8xbf16>
      %103 = vector.shape_cast %102 : vector<1x32x8xbf16> to vector<32x8xbf16>
      %cst_102 = arith.constant dense<0.000000e+00> : vector<8x8xf32>
      %104 = tpu.matmul %92, %103, %cst_102 {dimension_numbers = #tpu.dot_dimension_numbers<[1], [0], [0], [1], [0, 0, 1, 1], [], []>} : vector<8x32xbf16>, vector<32x8xbf16>, vector<8x8xf32> -> vector<8x8xf32>
      %cst_103 = arith.constant 0.353553385 : f32
      %105 = vector.broadcast %cst_103 : f32 to vector<8x8xf32>
      %106 = arith.mulf %104, %105 : vector<8x8xf32>
      %107 = arith.truncf %106 : vector<8x8xf32> to vector<8x8xbf16>
      %c1_104 = arith.constant 1 : index
      %c0_105 = arith.constant 0 : index
      %c0_106 = arith.constant 0 : index
      %108 = vector.load %arg11[%c1_104, %c0_105, %c0_106] : memref<4x8x8xbf16, #tpu.memory_space<vmem>>, vector<1x8x8xbf16>
      %109 = vector.shape_cast %108 : vector<1x8x8xbf16> to vector<8x8xbf16>
      %110 = vector.shape_cast %107 : vector<8x8xbf16> to vector<1x8x8xbf16>
      tpu.vector_store %arg11[%c1_104, %c0_105, %c0_106], %110 {strides = array<i32>} : memref<4x8x8xbf16, #tpu.memory_space<vmem>>, vector<1x8x8xbf16>,
      %c2_107 = arith.constant 2 : index
      %c0_108 = arith.constant 0 : index
      %c0_109 = arith.constant 0 : index
      %111 = vector.load %arg5[%c2_107, %c0_108, %c0_109] : memref<4x32x8xbf16, #tpu.memory_space<vmem>>, vector<1x32x8xbf16>
      %112 = vector.shape_cast %111 : vector<1x32x8xbf16> to vector<32x8xbf16>
      %cst_110 = arith.constant dense<0.000000e+00> : vector<8x8xf32>
      %113 = tpu.matmul %92, %112, %cst_110 {dimension_numbers = #tpu.dot_dimension_numbers<[1], [0], [0], [1], [0, 0, 1, 1], [], []>} : vector<8x32xbf16>, vector<32x8xbf16>, vector<8x8xf32> -> vector<8x8xf32>
      %cst_111 = arith.constant 0.353553385 : f32
      %114 = vector.broadcast %cst_111 : f32 to vector<8x8xf32>
      %115 = arith.mulf %113, %114 : vector<8x8xf32>
      %116 = arith.truncf %115 : vector<8x8xf32> to vector<8x8xbf16>
      %c2_112 = arith.constant 2 : index
      %c0_113 = arith.constant 0 : index
      %c0_114 = arith.constant 0 : index
      %117 = vector.load %arg11[%c2_112, %c0_113, %c0_114] : memref<4x8x8xbf16, #tpu.memory_space<vmem>>, vector<1x8x8xbf16>
      %118 = vector.shape_cast %117 : vector<1x8x8xbf16> to vector<8x8xbf16>
      %119 = vector.shape_cast %116 : vector<8x8xbf16> to vector<1x8x8xbf16>
      tpu.vector_store %arg11[%c2_112, %c0_113, %c0_114], %119 {strides = array<i32>} : memref<4x8x8xbf16, #tpu.memory_space<vmem>>, vector<1x8x8xbf16>,
      %c3_115 = arith.constant 3 : index
      %c0_116 = arith.constant 0 : index
      %c0_117 = arith.constant 0 : index
      %120 = vector.load %arg5[%c3_115, %c0_116, %c0_117] : memref<4x32x8xbf16, #tpu.memory_space<vmem>>, vector<1x32x8xbf16>
      %121 = vector.shape_cast %120 : vector<1x32x8xbf16> to vector<32x8xbf16>
      %cst_118 = arith.constant dense<0.000000e+00> : vector<8x8xf32>
      %122 = tpu.matmul %92, %121, %cst_118 {dimension_numbers = #tpu.dot_dimension_numbers<[1], [0], [0], [1], [0, 0, 1, 1], [], []>} : vector<8x32xbf16>, vector<32x8xbf16>, vector<8x8xf32> -> vector<8x8xf32>
      %cst_119 = arith.constant 0.353553385 : f32
      %123 = vector.broadcast %cst_119 : f32 to vector<8x8xf32>
      %124 = arith.mulf %122, %123 : vector<8x8xf32>
      %125 = arith.truncf %124 : vector<8x8xf32> to vector<8x8xbf16>
      %c3_120 = arith.constant 3 : index
      %c0_121 = arith.constant 0 : index
      %c0_122 = arith.constant 0 : index
      %126 = vector.load %arg11[%c3_120, %c0_121, %c0_122] : memref<4x8x8xbf16, #tpu.memory_space<vmem>>, vector<1x8x8xbf16>
      %127 = vector.shape_cast %126 : vector<1x8x8xbf16> to vector<8x8xbf16>
      %128 = vector.shape_cast %125 : vector<8x8xbf16> to vector<1x8x8xbf16>
      tpu.vector_store %arg11[%c3_120, %c0_121, %c0_122], %128 {strides = array<i32>} : memref<4x8x8xbf16, #tpu.memory_space<vmem>>, vector<1x8x8xbf16>,
      %cst_123 = arith.constant 0xFF800000 : f32
      %129 = vector.broadcast %cst_123 : f32 to vector<4x8x1xf32>
      %c0_124 = arith.constant 0 : index
      %c0_125 = arith.constant 0 : index
      %c0_126 = arith.constant 0 : index
      %130 = vector.load %arg14[%c0_124, %c0_125, %c0_126] : memref<4x8x1xf32, #tpu.memory_space<vmem>>, vector<4x8x1xf32>
      tpu.vector_store %arg14[%c0_124, %c0_125, %c0_126], %129 {strides = array<i32>} : memref<4x8x1xf32, #tpu.memory_space<vmem>>, vector<4x8x1xf32>,
      %cst_127 = arith.constant 0.000000e+00 : f32
      %131 = vector.broadcast %cst_127 : f32 to vector<4x8x1xf32>
      %c0_128 = arith.constant 0 : index
      %c0_129 = arith.constant 0 : index
      %c0_130 = arith.constant 0 : index
      %132 = vector.load %arg15[%c0_128, %c0_129, %c0_130] : memref<4x8x1xf32, #tpu.memory_space<vmem>>, vector<4x8x1xf32>
      tpu.vector_store %arg15[%c0_128, %c0_129, %c0_130], %131 {strides = array<i32>} : memref<4x8x1xf32, #tpu.memory_space<vmem>>, vector<4x8x1xf32>,
      %cst_131 = arith.constant 0.000000e+00 : f32
      %133 = vector.broadcast %cst_131 : f32 to vector<4x8x8xf32>
      %c0_132 = arith.constant 0 : index
      %c0_133 = arith.constant 0 : index
      %c0_134 = arith.constant 0 : index
      %134 = vector.load %arg16[%c0_132, %c0_133, %c0_134] : memref<4x8x8xf32, #tpu.memory_space<vmem>>, vector<4x8x8xf32>
      tpu.vector_store %arg16[%c0_132, %c0_133, %c0_134], %133 {strides = array<i32>} : memref<4x8x8xf32, #tpu.memory_space<vmem>>, vector<4x8x8xf32>,
    } else {
    }
    %c0 = arith.constant 0 : index
    %c0_1 = arith.constant 0 : index
    %c0_2 = arith.constant 0 : index
    %3 = vector.load %arg4[%c0, %c0_1, %c0_2] : memref<1x8x32xbf16, #tpu.memory_space<vmem>>, vector<1x8x32xbf16>
    %4 = vector.shape_cast %3 : vector<1x8x32xbf16> to vector<8x32xbf16>
    %c0_3 = arith.constant 0 : index
    %c0_4 = arith.constant 0 : index
    %c0_5 = arith.constant 0 : index
    %5 = vector.load %arg6[%c0_3, %c0_4, %c0_5] : memref<4x32x8xbf16, #tpu.memory_space<vmem>>, vector<1x32x8xbf16>
    %6 = vector.shape_cast %5 : vector<1x32x8xbf16> to vector<32x8xbf16>
    %cst = arith.constant dense<0.000000e+00> : vector<8x8xf32>
    %7 = tpu.matmul %4, %6, %cst {dimension_numbers = #tpu.dot_dimension_numbers<[1], [0], [0], [1], [0, 0, 1, 1], [], []>} : vector<8x32xbf16>, vector<32x8xbf16>, vector<8x8xf32> -> vector<8x8xf32>
    %8 = arith.truncf %7 : vector<8x8xf32> to vector<8x8xbf16>
    %c0_6 = arith.constant 0 : index
    %c0_7 = arith.constant 0 : index
    %c0_8 = arith.constant 0 : index
    %9 = vector.load %arg12[%c0_6, %c0_7, %c0_8] : memref<4x8x8xbf16, #tpu.memory_space<vmem>>, vector<1x8x8xbf16>
    %10 = vector.shape_cast %9 : vector<1x8x8xbf16> to vector<8x8xbf16>
    %11 = vector.shape_cast %8 : vector<8x8xbf16> to vector<1x8x8xbf16>
    tpu.vector_store %arg12[%c0_6, %c0_7, %c0_8], %11 {strides = array<i32>} : memref<4x8x8xbf16, #tpu.memory_space<vmem>>, vector<1x8x8xbf16>,
    %c0_9 = arith.constant 0 : index
    %c0_10 = arith.constant 0 : index
    %c0_11 = arith.constant 0 : index
    %12 = vector.load %arg7[%c0_9, %c0_10, %c0_11] : memref<4x32x8xbf16, #tpu.memory_space<vmem>>, vector<1x32x8xbf16>
    %13 = vector.shape_cast %12 : vector<1x32x8xbf16> to vector<32x8xbf16>
    %cst_12 = arith.constant dense<0.000000e+00> : vector<8x8xf32>
    %14 = tpu.matmul %4, %13, %cst_12 {dimension_numbers = #tpu.dot_dimension_numbers<[1], [0], [0], [1], [0, 0, 1, 1], [], []>} : vector<8x32xbf16>, vector<32x8xbf16>, vector<8x8xf32> -> vector<8x8xf32>
    %15 = arith.truncf %14 : vector<8x8xf32> to vector<8x8xbf16>
    %c0_13 = arith.constant 0 : index
    %c0_14 = arith.constant 0 : index
    %c0_15 = arith.constant 0 : index
    %16 = vector.load %arg13[%c0_13, %c0_14, %c0_15] : memref<4x8x8xbf16, #tpu.memory_space<vmem>>, vector<1x8x8xbf16>
    %17 = vector.shape_cast %16 : vector<1x8x8xbf16> to vector<8x8xbf16>
    %18 = vector.shape_cast %15 : vector<8x8xbf16> to vector<1x8x8xbf16>
    tpu.vector_store %arg13[%c0_13, %c0_14, %c0_15], %18 {strides = array<i32>} : memref<4x8x8xbf16, #tpu.memory_space<vmem>>, vector<1x8x8xbf16>,
    %c1 = arith.constant 1 : index
    %c0_16 = arith.constant 0 : index
    %c0_17 = arith.constant 0 : index
    %19 = vector.load %arg6[%c1, %c0_16, %c0_17] : memref<4x32x8xbf16, #tpu.memory_space<vmem>>, vector<1x32x8xbf16>
    %20 = vector.shape_cast %19 : vector<1x32x8xbf16> to vector<32x8xbf16>
    %cst_18 = arith.constant dense<0.000000e+00> : vector<8x8xf32>
    %21 = tpu.matmul %4, %20, %cst_18 {dimension_numbers = #tpu.dot_dimension_numbers<[1], [0], [0], [1], [0, 0, 1, 1], [], []>} : vector<8x32xbf16>, vector<32x8xbf16>, vector<8x8xf32> -> vector<8x8xf32>
    %22 = arith.truncf %21 : vector<8x8xf32> to vector<8x8xbf16>
    %c1_19 = arith.constant 1 : index
    %c0_20 = arith.constant 0 : index
    %c0_21 = arith.constant 0 : index
    %23 = vector.load %arg12[%c1_19, %c0_20, %c0_21] : memref<4x8x8xbf16, #tpu.memory_space<vmem>>, vector<1x8x8xbf16>
    %24 = vector.shape_cast %23 : vector<1x8x8xbf16> to vector<8x8xbf16>
    %25 = vector.shape_cast %22 : vector<8x8xbf16> to vector<1x8x8xbf16>
    tpu.vector_store %arg12[%c1_19, %c0_20, %c0_21], %25 {strides = array<i32>} : memref<4x8x8xbf16, #tpu.memory_space<vmem>>, vector<1x8x8xbf16>,
    %c1_22 = arith.constant 1 : index
    %c0_23 = arith.constant 0 : index
    %c0_24 = arith.constant 0 : index
    %26 = vector.load %arg7[%c1_22, %c0_23, %c0_24] : memref<4x32x8xbf16, #tpu.memory_space<vmem>>, vector<1x32x8xbf16>
    %27 = vector.shape_cast %26 : vector<1x32x8xbf16> to vector<32x8xbf16>
    %cst_25 = arith.constant dense<0.000000e+00> : vector<8x8xf32>
    %28 = tpu.matmul %4, %27, %cst_25 {dimension_numbers = #tpu.dot_dimension_numbers<[1], [0], [0], [1], [0, 0, 1, 1], [], []>} : vector<8x32xbf16>, vector<32x8xbf16>, vector<8x8xf32> -> vector<8x8xf32>
    %29 = arith.truncf %28 : vector<8x8xf32> to vector<8x8xbf16>
    %c1_26 = arith.constant 1 : index
    %c0_27 = arith.constant 0 : index
    %c0_28 = arith.constant 0 : index
    %30 = vector.load %arg13[%c1_26, %c0_27, %c0_28] : memref<4x8x8xbf16, #tpu.memory_space<vmem>>, vector<1x8x8xbf16>
    %31 = vector.shape_cast %30 : vector<1x8x8xbf16> to vector<8x8xbf16>
    %32 = vector.shape_cast %29 : vector<8x8xbf16> to vector<1x8x8xbf16>
    tpu.vector_store %arg13[%c1_26, %c0_27, %c0_28], %32 {strides = array<i32>} : memref<4x8x8xbf16, #tpu.memory_space<vmem>>, vector<1x8x8xbf16>,
    %c2 = arith.constant 2 : index
    %c0_29 = arith.constant 0 : index
    %c0_30 = arith.constant 0 : index
    %33 = vector.load %arg6[%c2, %c0_29, %c0_30] : memref<4x32x8xbf16, #tpu.memory_space<vmem>>, vector<1x32x8xbf16>
    %34 = vector.shape_cast %33 : vector<1x32x8xbf16> to vector<32x8xbf16>
    %cst_31 = arith.constant dense<0.000000e+00> : vector<8x8xf32>
    %35 = tpu.matmul %4, %34, %cst_31 {dimension_numbers = #tpu.dot_dimension_numbers<[1], [0], [0], [1], [0, 0, 1, 1], [], []>} : vector<8x32xbf16>, vector<32x8xbf16>, vector<8x8xf32> -> vector<8x8xf32>
    %36 = arith.truncf %35 : vector<8x8xf32> to vector<8x8xbf16>
    %c2_32 = arith.constant 2 : index
    %c0_33 = arith.constant 0 : index
    %c0_34 = arith.constant 0 : index
    %37 = vector.load %arg12[%c2_32, %c0_33, %c0_34] : memref<4x8x8xbf16, #tpu.memory_space<vmem>>, vector<1x8x8xbf16>
    %38 = vector.shape_cast %37 : vector<1x8x8xbf16> to vector<8x8xbf16>
    %39 = vector.shape_cast %36 : vector<8x8xbf16> to vector<1x8x8xbf16>
    tpu.vector_store %arg12[%c2_32, %c0_33, %c0_34], %39 {strides = array<i32>} : memref<4x8x8xbf16, #tpu.memory_space<vmem>>, vector<1x8x8xbf16>,
    %c2_35 = arith.constant 2 : index
    %c0_36 = arith.constant 0 : index
    %c0_37 = arith.constant 0 : index
    %40 = vector.load %arg7[%c2_35, %c0_36, %c0_37] : memref<4x32x8xbf16, #tpu.memory_space<vmem>>, vector<1x32x8xbf16>
    %41 = vector.shape_cast %40 : vector<1x32x8xbf16> to vector<32x8xbf16>
    %cst_38 = arith.constant dense<0.000000e+00> : vector<8x8xf32>
    %42 = tpu.matmul %4, %41, %cst_38 {dimension_numbers = #tpu.dot_dimension_numbers<[1], [0], [0], [1], [0, 0, 1, 1], [], []>} : vector<8x32xbf16>, vector<32x8xbf16>, vector<8x8xf32> -> vector<8x8xf32>
    %43 = arith.truncf %42 : vector<8x8xf32> to vector<8x8xbf16>
    %c2_39 = arith.constant 2 : index
    %c0_40 = arith.constant 0 : index
    %c0_41 = arith.constant 0 : index
    %44 = vector.load %arg13[%c2_39, %c0_40, %c0_41] : memref<4x8x8xbf16, #tpu.memory_space<vmem>>, vector<1x8x8xbf16>
    %45 = vector.shape_cast %44 : vector<1x8x8xbf16> to vector<8x8xbf16>
    %46 = vector.shape_cast %43 : vector<8x8xbf16> to vector<1x8x8xbf16>
    tpu.vector_store %arg13[%c2_39, %c0_40, %c0_41], %46 {strides = array<i32>} : memref<4x8x8xbf16, #tpu.memory_space<vmem>>, vector<1x8x8xbf16>,
    %c3 = arith.constant 3 : index
    %c0_42 = arith.constant 0 : index
    %c0_43 = arith.constant 0 : index
    %47 = vector.load %arg6[%c3, %c0_42, %c0_43] : memref<4x32x8xbf16, #tpu.memory_space<vmem>>, vector<1x32x8xbf16>
    %48 = vector.shape_cast %47 : vector<1x32x8xbf16> to vector<32x8xbf16>
    %cst_44 = arith.constant dense<0.000000e+00> : vector<8x8xf32>
    %49 = tpu.matmul %4, %48, %cst_44 {dimension_numbers = #tpu.dot_dimension_numbers<[1], [0], [0], [1], [0, 0, 1, 1], [], []>} : vector<8x32xbf16>, vector<32x8xbf16>, vector<8x8xf32> -> vector<8x8xf32>
    %50 = arith.truncf %49 : vector<8x8xf32> to vector<8x8xbf16>
    %c3_45 = arith.constant 3 : index
    %c0_46 = arith.constant 0 : index
    %c0_47 = arith.constant 0 : index
    %51 = vector.load %arg12[%c3_45, %c0_46, %c0_47] : memref<4x8x8xbf16, #tpu.memory_space<vmem>>, vector<1x8x8xbf16>
    %52 = vector.shape_cast %51 : vector<1x8x8xbf16> to vector<8x8xbf16>
    %53 = vector.shape_cast %50 : vector<8x8xbf16> to vector<1x8x8xbf16>
    tpu.vector_store %arg12[%c3_45, %c0_46, %c0_47], %53 {strides = array<i32>} : memref<4x8x8xbf16, #tpu.memory_space<vmem>>, vector<1x8x8xbf16>,
    %c3_48 = arith.constant 3 : index
    %c0_49 = arith.constant 0 : index
    %c0_50 = arith.constant 0 : index
    %54 = vector.load %arg7[%c3_48, %c0_49, %c0_50] : memref<4x32x8xbf16, #tpu.memory_space<vmem>>, vector<1x32x8xbf16>
    %55 = vector.shape_cast %54 : vector<1x32x8xbf16> to vector<32x8xbf16>
    %cst_51 = arith.constant dense<0.000000e+00> : vector<8x8xf32>
    %56 = tpu.matmul %4, %55, %cst_51 {dimension_numbers = #tpu.dot_dimension_numbers<[1], [0], [0], [1], [0, 0, 1, 1], [], []>} : vector<8x32xbf16>, vector<32x8xbf16>, vector<8x8xf32> -> vector<8x8xf32>
    %57 = arith.truncf %56 : vector<8x8xf32> to vector<8x8xbf16>
    %c3_52 = arith.constant 3 : index
    %c0_53 = arith.constant 0 : index
    %c0_54 = arith.constant 0 : index
    %58 = vector.load %arg13[%c3_52, %c0_53, %c0_54] : memref<4x8x8xbf16, #tpu.memory_space<vmem>>, vector<1x8x8xbf16>
    %59 = vector.shape_cast %58 : vector<1x8x8xbf16> to vector<8x8xbf16>
    %60 = vector.shape_cast %57 : vector<8x8xbf16> to vector<1x8x8xbf16>
    tpu.vector_store %arg13[%c3_52, %c0_53, %c0_54], %60 {strides = array<i32>} : memref<4x8x8xbf16, #tpu.memory_space<vmem>>, vector<1x8x8xbf16>,
    %c0_55 = arith.constant 0 : index
    %c0_56 = arith.constant 0 : index
    %c0_57 = arith.constant 0 : index
    %61 = vector.load %arg11[%c0_55, %c0_56, %c0_57] : memref<4x8x8xbf16, #tpu.memory_space<vmem>>, vector<4x8x8xbf16>
    %c0_58 = arith.constant 0 : index
    %c0_59 = arith.constant 0 : index
    %c0_60 = arith.constant 0 : index
    %62 = vector.load %arg12[%c0_58, %c0_59, %c0_60] : memref<4x8x8xbf16, #tpu.memory_space<vmem>>, vector<4x8x8xbf16>
    "tpu.trace_start"() <{level = 10 : i32, message = "hqd,hkd->hqk"}> : () -> ()
    %cst_61 = arith.constant dense<0.000000e+00> : vector<4x8x8xf32>
    %63 = tpu.matmul %61, %62, %cst_61 {dimension_numbers = #tpu.dot_dimension_numbers<[2], [2], [1], [1], [0, 0, 0, 1, 1, 1], [0], [0]>} : vector<4x8x8xbf16>, vector<4x8x8xbf16>, vector<4x8x8xf32> -> vector<4x8x8xf32>
    "tpu.trace_stop"() : () -> ()
    %c0_62 = arith.constant 0 : index
    %c0_63 = arith.constant 0 : index
    %c0_64 = arith.constant 0 : index
    %64 = vector.load %arg14[%c0_62, %c0_63, %c0_64] : memref<4x8x1xf32, #tpu.memory_space<vmem>>, vector<4x8x1xf32>
    %cst_65 = arith.constant dense<0xFF800000> : vector<4x8xf32>
    %65 = vector.multi_reduction <maximumf>, %63, %cst_65 [2] : vector<4x8x8xf32> to vector<4x8xf32>
    %66 = vector.shape_cast %65 : vector<4x8xf32> to vector<4x8x1xf32>
    %67 = arith.maximumf %64, %66 : vector<4x8x1xf32>
    %68 = arith.subf %64, %67 : vector<4x8x1xf32>
    %69 = math.exp %68 : vector<4x8x1xf32>
    %70 = vector.broadcast %67 : vector<4x8x1xf32> to vector<4x8x8xf32>
    %71 = arith.subf %63, %70 : vector<4x8x8xf32>
    %72 = math.exp %71 : vector<4x8x8xf32>
    %c0_66 = arith.constant 0 : index
    %c0_67 = arith.constant 0 : index
    %c0_68 = arith.constant 0 : index
    %73 = vector.load %arg15[%c0_66, %c0_67, %c0_68] : memref<4x8x1xf32, #tpu.memory_space<vmem>>, vector<4x8x1xf32>
    %74 = arith.mulf %69, %73 : vector<4x8x1xf32>
    %cst_69 = arith.constant dense<0.000000e+00> : vector<4x8xf32>
    %75 = vector.multi_reduction <add>, %72, %cst_69 [2] : vector<4x8x8xf32> to vector<4x8xf32>
    %76 = vector.shape_cast %75 : vector<4x8xf32> to vector<4x8x1xf32>
    %77 = arith.addf %74, %76 : vector<4x8x1xf32>
    %c0_70 = arith.constant 0 : index
    %c0_71 = arith.constant 0 : index
    %c0_72 = arith.constant 0 : index
    %78 = vector.load %arg15[%c0_70, %c0_71, %c0_72] : memref<4x8x1xf32, #tpu.memory_space<vmem>>, vector<4x8x1xf32>
    tpu.vector_store %arg15[%c0_70, %c0_71, %c0_72], %77 {strides = array<i32>} : memref<4x8x1xf32, #tpu.memory_space<vmem>>, vector<4x8x1xf32>,
    %c0_73 = arith.constant 0 : index
    %c0_74 = arith.constant 0 : index
    %c0_75 = arith.constant 0 : index
    %79 = vector.load %arg16[%c0_73, %c0_74, %c0_75] : memref<4x8x8xf32, #tpu.memory_space<vmem>>, vector<4x8x8xf32>
    %80 = vector.broadcast %69 : vector<4x8x1xf32> to vector<4x8x8xf32>
    %81 = arith.mulf %80, %79 : vector<4x8x8xf32>
    %82 = arith.truncf %72 : vector<4x8x8xf32> to vector<4x8x8xbf16>
    %c0_76 = arith.constant 0 : index
    %c0_77 = arith.constant 0 : index
    %c0_78 = arith.constant 0 : index
    %83 = vector.load %arg13[%c0_76, %c0_77, %c0_78] : memref<4x8x8xbf16, #tpu.memory_space<vmem>>, vector<4x8x8xbf16>
    "tpu.trace_start"() <{level = 10 : i32, message = "hqk,hkd->hqd"}> : () -> ()
    %cst_79 = arith.constant dense<0.000000e+00> : vector<4x8x8xf32>
    %84 = tpu.matmul %82, %83, %cst_79 {dimension_numbers = #tpu.dot_dimension_numbers<[2], [1], [1], [2], [0, 0, 0, 1, 1, 2], [0], [0]>} : vector<4x8x8xbf16>, vector<4x8x8xbf16>, vector<4x8x8xf32> -> vector<4x8x8xf32>
    "tpu.trace_stop"() : () -> ()
    %85 = arith.addf %81, %84 : vector<4x8x8xf32>
    %c0_80 = arith.constant 0 : index
    %c0_81 = arith.constant 0 : index
    %c0_82 = arith.constant 0 : index
    %86 = vector.load %arg16[%c0_80, %c0_81, %c0_82] : memref<4x8x8xf32, #tpu.memory_space<vmem>>, vector<4x8x8xf32>
    tpu.vector_store %arg16[%c0_80, %c0_81, %c0_82], %85 {strides = array<i32>} : memref<4x8x8xf32, #tpu.memory_space<vmem>>, vector<4x8x8xf32>,
    %c0_83 = arith.constant 0 : index
    %c0_84 = arith.constant 0 : index
    %c0_85 = arith.constant 0 : index
    %87 = vector.load %arg14[%c0_83, %c0_84, %c0_85] : memref<4x8x1xf32, #tpu.memory_space<vmem>>, vector<4x8x1xf32>
    tpu.vector_store %arg14[%c0_83, %c0_84, %c0_85], %67 {strides = array<i32>} : memref<4x8x1xf32, #tpu.memory_space<vmem>>, vector<4x8x1xf32>,
    %c0_i32_86 = arith.constant 0 : i32
    %88 = arith.cmpi eq, %arg2, %c0_i32_86 : i32
    %89 = arith.extui %88 : i1 to i32
    %c0_i32_87 = arith.constant 0 : i32
    %90 = arith.cmpi ne, %89, %c0_i32_87 : i32
    scf.if %90 {
      %c0_88 = arith.constant 0 : index
      %c0_89 = arith.constant 0 : index
      %c0_90 = arith.constant 0 : index
      %91 = vector.load %arg15[%c0_88, %c0_89, %c0_90] : memref<4x8x1xf32, #tpu.memory_space<vmem>>, vector<4x8x1xf32>
      %92 = tpu.reciprocal %91 {approx = true} : vector<4x8x1xf32> -> vector<4x8x1xf32>
      %c0_91 = arith.constant 0 : index
      %c0_92 = arith.constant 0 : index
      %c0_93 = arith.constant 0 : index
      %93 = vector.load %arg16[%c0_91, %c0_92, %c0_93] : memref<4x8x8xf32, #tpu.memory_space<vmem>>, vector<4x8x8xf32>
      %94 = vector.broadcast %92 : vector<4x8x1xf32> to vector<4x8x8xf32>
      %95 = arith.mulf %93, %94 : vector<4x8x8xf32>
      %96 = arith.truncf %95 : vector<4x8x8xf32> to vector<4x8x8xbf16>
      %cst_94 = arith.constant 0.000000e+00 : f32
      %97 = vector.broadcast %cst_94 : f32 to vector<8x32xf32>
      %98 = vector.extract_strided_slice %96 {offsets = [0, 0, 0], sizes = [1, 8, 8], strides = [1, 1, 1]} : vector<4x8x8xbf16> to vector<1x8x8xbf16>
      %99 = vector.shape_cast %98 : vector<1x8x8xbf16> to vector<8x8xbf16>
      %c0_95 = arith.constant 0 : index
      %c0_96 = arith.constant 0 : index
      %c0_97 = arith.constant 0 : index
      %100 = vector.load %arg8[%c0_95, %c0_96, %c0_97] : memref<4x8x32xbf16, #tpu.memory_space<vmem>>, vector<1x8x32xbf16>
      %101 = vector.shape_cast %100 : vector<1x8x32xbf16> to vector<8x32xbf16>
      %cst_98 = arith.constant dense<0.000000e+00> : vector<8x32xf32>
      %102 = tpu.matmul %99, %101, %cst_98 {dimension_numbers = #tpu.dot_dimension_numbers<[1], [0], [0], [1], [0, 0, 1, 1], [], []>} : vector<8x8xbf16>, vector<8x32xbf16>, vector<8x32xf32> -> vector<8x32xf32>
      %103 = arith.addf %97, %102 : vector<8x32xf32>
      %104 = vector.extract_strided_slice %96 {offsets = [1, 0, 0], sizes = [1, 8, 8], strides = [1, 1, 1]} : vector<4x8x8xbf16> to vector<1x8x8xbf16>
      %105 = vector.shape_cast %104 : vector<1x8x8xbf16> to vector<8x8xbf16>
      %c1_99 = arith.constant 1 : index
      %c0_100 = arith.constant 0 : index
      %c0_101 = arith.constant 0 : index
      %106 = vector.load %arg8[%c1_99, %c0_100, %c0_101] : memref<4x8x32xbf16, #tpu.memory_space<vmem>>, vector<1x8x32xbf16>
      %107 = vector.shape_cast %106 : vector<1x8x32xbf16> to vector<8x32xbf16>
      %cst_102 = arith.constant dense<0.000000e+00> : vector<8x32xf32>
      %108 = tpu.matmul %105, %107, %cst_102 {dimension_numbers = #tpu.dot_dimension_numbers<[1], [0], [0], [1], [0, 0, 1, 1], [], []>} : vector<8x8xbf16>, vector<8x32xbf16>, vector<8x32xf32> -> vector<8x32xf32>
      %109 = arith.addf %103, %108 : vector<8x32xf32>
      %110 = vector.extract_strided_slice %96 {offsets = [2, 0, 0], sizes = [1, 8, 8], strides = [1, 1, 1]} : vector<4x8x8xbf16> to vector<1x8x8xbf16>
      %111 = vector.shape_cast %110 : vector<1x8x8xbf16> to vector<8x8xbf16>
      %c2_103 = arith.constant 2 : index
      %c0_104 = arith.constant 0 : index
      %c0_105 = arith.constant 0 : index
      %112 = vector.load %arg8[%c2_103, %c0_104, %c0_105] : memref<4x8x32xbf16, #tpu.memory_space<vmem>>, vector<1x8x32xbf16>
      %113 = vector.shape_cast %112 : vector<1x8x32xbf16> to vector<8x32xbf16>
      %cst_106 = arith.constant dense<0.000000e+00> : vector<8x32xf32>
      %114 = tpu.matmul %111, %113, %cst_106 {dimension_numbers = #tpu.dot_dimension_numbers<[1], [0], [0], [1], [0, 0, 1, 1], [], []>} : vector<8x8xbf16>, vector<8x32xbf16>, vector<8x32xf32> -> vector<8x32xf32>
      %115 = arith.addf %109, %114 : vector<8x32xf32>
      %116 = vector.extract_strided_slice %96 {offsets = [3, 0, 0], sizes = [1, 8, 8], strides = [1, 1, 1]} : vector<4x8x8xbf16> to vector<1x8x8xbf16>
      %117 = vector.shape_cast %116 : vector<1x8x8xbf16> to vector<8x8xbf16>
      %c3_107 = arith.constant 3 : index
      %c0_108 = arith.constant 0 : index
      %c0_109 = arith.constant 0 : index
      %118 = vector.load %arg8[%c3_107, %c0_108, %c0_109] : memref<4x8x32xbf16, #tpu.memory_space<vmem>>, vector<1x8x32xbf16>
      %119 = vector.shape_cast %118 : vector<1x8x32xbf16> to vector<8x32xbf16>
      %cst_110 = arith.constant dense<0.000000e+00> : vector<8x32xf32>
      %120 = tpu.matmul %117, %119, %cst_110 {dimension_numbers = #tpu.dot_dimension_numbers<[1], [0], [0], [1], [0, 0, 1, 1], [], []>} : vector<8x8xbf16>, vector<8x32xbf16>, vector<8x32xf32> -> vector<8x32xf32>
      %121 = arith.addf %115, %120 : vector<8x32xf32>
      %c0_111 = arith.constant 0 : index
      %c0_112 = arith.constant 0 : index
      %122 = vector.load %arg9[%c0_111, %c0_112] : memref<1x32xf32, #tpu.memory_space<vmem>>, vector<1x32xf32>
      %123 = vector.broadcast %122 : vector<1x32xf32> to vector<8x32xf32>
      %124 = arith.addf %121, %123 : vector<8x32xf32>
      %c0_113 = arith.constant 0 : index
      %c0_114 = arith.constant 0 : index
      %c0_115 = arith.constant 0 : index
      %125 = vector.load %arg10[%c0_113, %c0_114, %c0_115] : memref<1x8x32xf32, #tpu.memory_space<vmem>>, vector<1x8x32xf32>
      %126 = vector.shape_cast %125 : vector<1x8x32xf32> to vector<8x32xf32>
      %127 = vector.shape_cast %124 : vector<8x32xf32> to vector<1x8x32xf32>
      tpu.vector_store %arg10[%c0_113, %c0_114, %c0_115], %127 {strides = array<i32>} : memref<1x8x32xf32, #tpu.memory_space<vmem>>, vector<1x8x32xf32>,
    } else {
    }
    return
  }
  func.func @transform_0(%arg0: i32, %arg1: i32, %arg2: i32) -> (i32, i32, i32) {
    %c0_i32 = arith.constant 0 : i32
    %c0_i32_0 = arith.constant 0 : i32
    return %arg0, %arg1, %c0_i32 : i32, i32, i32
  }
  func.func @transform_1(%arg0: i32, %arg1: i32, %arg2: i32) -> (i32, i32, i32) {
    %c0_i32 = arith.constant 0 : i32
    %c0_i32_0 = arith.constant 0 : i32
    return %arg0, %arg2, %c0_i32 : i32, i32, i32
  }
  func.func @transform_2(%arg0: i32, %arg1: i32, %arg2: i32) -> (i32, i32, i32) {
    %c0_i32 = arith.constant 0 : i32
    %c0_i32_0 = arith.constant 0 : i32
    %c0_i32_1 = arith.constant 0 : i32
    %c0_i32_2 = arith.constant 0 : i32
    return %c0_i32, %c0_i32_0, %c0_i32_1 : i32, i32, i32
  }
  func.func @transform_3(%arg0: i32, %arg1: i32, %arg2: i32) -> (i32, i32, i32) {
    %c0_i32 = arith.constant 0 : i32
    %c0_i32_0 = arith.constant 0 : i32
    %c0_i32_1 = arith.constant 0 : i32
    %c0_i32_2 = arith.constant 0 : i32
    return %c0_i32, %c0_i32_0, %c0_i32_1 : i32, i32, i32
  }
  func.func @transform_4(%arg0: i32, %arg1: i32, %arg2: i32) -> (i32, i32, i32) {
    %c0_i32 = arith.constant 0 : i32
    %c0_i32_0 = arith.constant 0 : i32
    %c0_i32_1 = arith.constant 0 : i32
    %c0_i32_2 = arith.constant 0 : i32
    return %c0_i32, %c0_i32_0, %c0_i32_1 : i32, i32, i32
  }
  func.func @transform_5(%arg0: i32, %arg1: i32, %arg2: i32) -> (i32, i32, i32) {
    %c0_i32 = arith.constant 0 : i32
    %c0_i32_0 = arith.constant 0 : i32
    %c0_i32_1 = arith.constant 0 : i32
    %c0_i32_2 = arith.constant 0 : i32
    return %c0_i32, %c0_i32_0, %c0_i32_1 : i32, i32, i32
  }
  func.func @transform_6(%arg0: i32, %arg1: i32, %arg2: i32) -> (i32, i32) {
    %c0_i32 = arith.constant 0 : i32
    %c0_i32_0 = arith.constant 0 : i32
    %c0_i32_1 = arith.constant 0 : i32
    return %c0_i32, %c0_i32_0 : i32, i32
  }
  func.func @transform_7(%arg0: i32, %arg1: i32, %arg2: i32) -> (i32, i32, i32) {
    %c0_i32 = arith.constant 0 : i32
    %c0_i32_0 = arith.constant 0 : i32
    return %arg0, %arg1, %c0_i32 : i32, i32, i32
  }
}

</mosaic_0001>

<bundles_post_ra>
// kernel: tpu_custom_call.1
= control target key start
LH: loop header
LB: loop body
LE: loop exit
PB: predicated region body
PF: predicated region fallthrough
CT: control target
= control target key end

     0   :  { %12 = vsyncpa [#allocation9], 0  ;;  %s2922_s0 = inlined_call_operand.vmem [shape: bf16[2,8,32], index: 0, kind: input, shape index: {}]   ;;  %s2923_s1 = inlined_call_operand.vmem [shape: bf16[2,8,32], index: 1, kind: input, shape index: {}]   ;;  %s2924_s2 = inlined_call_operand.vmem [shape: bf16[4,32,8], index: 2, kind: input, shape index: {}]   ;;  %s2925_s3 = inlined_call_operand.vmem [shape: bf16[4,32,8], index: 3, kind: input, shape index: {}]   ;;  %s2926_s4 = inlined_call_operand.vmem [shape: bf16[4,32,8], index: 4, kind: input, shape index: {}]   ;;  %s2927_s5 = inlined_call_operand.vmem [shape: bf16[4,8,32], index: 5, kind: input, shape index: {}]   ;;  %s2928_s6 = inlined_call_operand.vmem [shape: f32[1,32], index: 6, kind: input, shape index: {}]   ;;  %s2929_s7 = inlined_call_operand.hbm [shape: f32[2,8,32], index: 7, kind: output, shape index: {}]  }
   0x1   :  { %14 = vsyncpa [#allocation9 + $0x1], 0  ;;  %s2513_s24 = smov 0   ;;  %s2515_s25 = smov 0  }
   0x2   :  { %s2517_s26 = smov 0   ;;  %s2519_s27 = smov 0  }
   0x3   :  { %s2521_s28 = smov 0   ;;  %s2523_s29 = smov 0  }
   0x4 LB: > { %s1951_s30 = sadd.s32 4294967295, %s2466_s29   ;;  %s1952_s8 = sadd.s32 4294967294, %s2466_s29   ;;  %s2466_s29 = sphi %s2523_s29, %s20_s29   ;;  %s2462_s28 = sphi %s2521_s28, %s2936_s28   ;;  %s2458_s27 = sphi %s2519_s27, %s2935_s27   ;;  %s2454_s26 = sphi %s2517_s26, %s2934_s26   ;;  %s2450_s25 = sphi %s2515_s25, %s2933_s25   ;;  %s2446_s24 = sphi %s2513_s24, %s2932_s24  }
   0x5   : > { %s39_s9 = sadd.s32 1, %s2462_s28  ;;  %s209_s10 = sadd.s32 1, %s2454_s26 }
   0x6   : > { %p41_p0 = scmp.ge.s32.totalorder %s39_s9, 2  ;;  %p219_p1 = scmp.ne.s32.totalorder %s2454_s26, %s2450_s25 }
   0x7   : > { %p220_p2 = scmp.eq.s32.totalorder %s1951_s30, 1  ;;  %p225_p3 = scmp.ne.s32.totalorder %s2450_s25, %s2446_s24 }
   0x8   : > { %s2938_s9 = smov (%p41_p0, %s39_s9), 0  ;;  %p226_p5 = scmp.eq.s32.totalorder %s1952_s8, 1 }
   0x9   : > { %p2553_p4 = por %p220_p2, %p219_p1  ;;  %s204_s12 = ssub.s32 %s2462_s28, %s2938_s9 }
   0xa   : > { %p1955_p6 = scmp.ge.s32.totalorder %s2466_s29, 1  ;;  %p207_p7 = scmp.eq.s32.totalorder %s204_s12, 0 }
   0xb   : > { %p2560_p8 = por %p226_p5, %p225_p3  ;;  %p279_p9 = scmp.lt.s32.totalorder %s2466_s29, 3 }
   0xc   : > { %s2566_s14 = scalar_select %p207_p7, %s2454_s26, %s209_s10  }
   0xd   : > { %p280_p10 = pnand %p1955_p6, %p279_p9 }
   0xe   : > { %v2340_v0 = vld [vmem:[%s2924_s2] sm:$0xff] (!%p280_p10)   ;;  %v2468_v1 = vmov (!%p280_p10), 0.0   ;;  %v2341_v2 = vld [vmem:[%s2924_s2 + $0x8] sm:$0xff] (!%p280_p10)   ;;  %vm2469_vm0 = vmmov (!%p280_p10), 0   ;;  %p320_p11 = scmp.lt.s32.totalorder (!%p280_p10), %s2458_s27, 1  ;;  %vm356_vm1 = vcmask (!%p280_p10), 261120  }
   0xf   : > { %283 = sbr.rel (%p280_p10) target bundleno = 1323 (0x52b), region = 48  ;;  %2111 = vmatprep.subr.bf16.mxu0 (!%p280_p10), %v2468_v1  ;;  %2119 = vmatprep.subr.bf16.mxu1 (!%p280_p10), %v2468_v1  ;;  %v2342_v3 = vld [vmem:[%s2924_s2 + $0x20] sm:$0xff] (!%p280_p10)   ;;  %v2348_v5 = vld [vmem:[%s2924_s2 + $0x10] sm:$0xff] (!%p280_p10)   ;;  %v2343_v6 = vld [vmem:[%s2924_s2 + $0x28] sm:$0xff] (!%p280_p10)   ;;  %vm596_vm2 = vcmask (!%p280_p10), 64512   ;;  %vm402_vm3 = vcmask (!%p280_p10), 60416  }
  0x10   : > { %2112 = vmatpush3.bf16.msra.mxu0 (!%p280_p10), %v2340_v0  ;;  %2115 = vmatprep.mubr.msk.bf16.mxu0 (!%p280_p10), %vm2469_vm0, %v2468_v1  ;;  %v2350_v7 = vld [vmem:[%s2924_s2 + $0x18] sm:$0xff] (!%p280_p10)   ;;  %v2344_v8 = vld [vmem:[%s2925_s3] sm:$0xff] (!%p280_p10)   ;;  %v2353_v9 = vld [vmem:[%s2924_s2 + $0x30] sm:$0xff] (!%p280_p10)   ;;  %597 = vst.msk [vmem:[#allocation7] sm:$0xff] (!%p280_p10), %vm596_vm2, %v2468_v1  ;;  %vm1408_vm4 = vcmask (!%p280_p10), 1043456   ;;  %vm587_vm5 = vcmask (!%p280_p10), 7168  }
  0x11   : > { %2113 = vmatprep.subr.bf16.mxu0 (!%p280_p10), %v2468_v1  ;;  %2123 = vmatprep.mubr.msk.bf16.mxu1 (!%p280_p10), %vm2469_vm0, %v2468_v1  ;;  %v2345_v10 = vld [vmem:[%s2925_s3 + $0x8] sm:$0xff] (!%p280_p10)   ;;  %v2355_v11 = vld [vmem:[%s2924_s2 + $0x38] sm:$0xff] (!%p280_p10)   ;;  %v2346_v12 = vld [vmem:[%s2925_s3 + $0x10] sm:$0xff] (!%p280_p10)   ;;  %598 = vst.msk [vmem:[#allocation7 + $0x8] sm:$0xff] (!%p280_p10), %vm596_vm2, %v2468_v1  ;;  %s317_s15 = sand.u32 (!%p280_p10), 1, %s2450_s25   ;;  %s2472_s10 = smov (!%p280_p10), [#allocation8]  }
  0x12   : > { %2120 = vmatpush3.bf16.msra.mxu1 (!%p280_p10), %v2348_v5  ;;  %v2356_v14 = vld [vmem:[%s2926_s4] sm:$0xff] (!%p280_p10)   ;;  %v2347_v15 = vld [vmem:[%s2925_s3 + $0x18] sm:$0xff] (!%p280_p10)   ;;  %v2351_v17 = vld [vmem:[%s2925_s3 + $0x28] sm:$0xff] (!%p280_p10)   ;;  %599 = vst.msk [vmem:[#allocation7 + $0x10] sm:$0xff] (!%p280_p10), %vm596_vm2, %v2468_v1  ;;  %s1956_s16 = sshll.u32 (!%p280_p10), %s317_s15, 3  ;;  %s2392_s12 = sshll.u32 (!%p280_p10), %s2472_s10, 4  ;;  %s2393_s12 = int_to_ptr.vmem [resolvable:$false] %s2392_s12 }
  0x13   : > { %2121 = vmatprep.subr.bf16.mxu1 (!%p280_p10), %v2468_v1  ;;  %v2349_v16 = vld [vmem:[%s2925_s3 + $0x20] sm:$0xff] (!%p280_p10)   ;;  %v2352_v18 = vld [vmem:[%s2925_s3 + $0x30] sm:$0xff] (!%p280_p10)   ;;  %v2354_v19 = vld [vmem:[%s2925_s3 + $0x38] sm:$0xff] (!%p280_p10)   ;;  %600 = vst.msk [vmem:[#allocation7 + $0x18] sm:$0xff] (!%p280_p10), %vm596_vm2, %v2468_v1 }
  0x14   : > { %2114 = vmatpush3.bf16.msra.mxu0 (!%p280_p10), %v2341_v2  ;;  %v2357_v20 = vld [vmem:[%s2926_s4 + $0x8] sm:$0xff] (!%p280_p10)   ;;  %v2358_v21 = vld [vmem:[%s2926_s4 + $0x10] sm:$0xff] (!%p280_p10)   ;;  %v2359_v22 = vld [vmem:[%s2926_s4 + $0x18] sm:$0xff] (!%p280_p10)   ;;  %592 = vst.msk [vmem:[#allocation6] sm:$0xff] (!%p280_p10), %vm587_vm5, %v2468_v1 }
  0x15   : > { %2127 = vmatprep.subr.bf16.mxu0 (!%p280_p10), %v2468_v1  ;;  %v2360_v23 = vld [vmem:[%s2926_s4 + $0x20] sm:$0xff] (!%p280_p10)   ;;  %v2361_v24 = vld [vmem:[%s2926_s4 + $0x28] sm:$0xff] (!%p280_p10)   ;;  %v2362_v25 = vld [vmem:[%s2926_s4 + $0x30] sm:$0xff] (!%p280_p10)   ;;  %593 = vst.msk [vmem:[#allocation6 + $0x8] sm:$0xff] (!%p280_p10), %vm587_vm5, %v2468_v1 }
  0x16   : > { %s2583_s19 = scalar_select %p320_p11, %s2458_s27, 1  ;;  %2122 = vmatpush3.bf16.msra.mxu1 %v2350_v7  ;;  %v2363_v26 = vld [vmem:[%s2926_s4 + $0x38] sm:$0xff]   ;;  %594 = vst.msk [vmem:[#allocation6 + $0x10] sm:$0xff] %vm587_vm5, %v2468_v1  ;;  %595 = vst.msk [vmem:[#allocation6 + $0x18] sm:$0xff] %vm587_vm5, %v2468_v1 }
  0x17   : > { %2135 = vmatprep.subr.bf16.mxu1 %v2468_v1 }
  0x18   : > { %s1957_s20 = sshll.u32 %s2583_s19, 2  ;;  %s2048_s19 = sshll.u32 %s2458_s27, 7 }
  0x19   : > { %s326_s8 = scalar_lea.vmem %s2922_s0, %s1957_s20  ;;  %s333_s17 = scalar_lea.vmem %s2923_s1, %s1957_s20 }
  0x1a   : > { %v339_v4 = vld [vmem:[%s326_s8] sm:$0xf]  ;;  %s319_s20 = scalar_lea.vmem [#allocation8], %s1956_s16  ;;  %s2874_s30 = scalar_lea.hbm %s2929_s7, %s2048_s19 }
  0x1b   : > { %2116 = vmatmul.mubr.msk.bf16.vlgmr.msra.gmra.mrb[0].mxu0 %vm356_vm1, %v339_v4  ;;  %2124 = vmatmul.mubr.msk.bf16.vlgmr.msra.gmra.mrb[0].mxu1 %vm356_vm1, %v339_v4  ;;  %v2635_v13 = vld [vmem:[%s333_s17] sm:$0xf]  ;;  %s1862_s21 = sshll.u32 %s319_s20, 4  ;;  %s1848_s27 = scalar_lea.sflag [#allocation9], %s317_s15  ;;  %s2876_s21 = int_to_ptr.vmem [resolvable:$true] %s1862_s21 }
  0x1c   : > { %2128 = vmatpush3.bf16.msra.mxu0 %v2342_v3  ;;  %2131 = vmatprep.mubr.msk.bf16.mxu0 %vm2469_vm0, %v2468_v1  ;;  %s2388_s8 = scalar_lea.vmem %s2876_s21, 128  ;;  %s2394_s16 = scalar_lea.vmem %s2393_s12, 256 }
  0x1d   : > { %2129 = vmatprep.subr.bf16.mxu0 %v2468_v1  ;;  %2136 = vmatpush3.bf16.msra.mxu1 %v2353_v9  ;;  %p2389_p12 = scmp.ne.s32.totalorder %s2876_s21, %s2388_s8  ;;  %p2395_p1 = scmp.lt.s32.totalorder %s2876_s21, %s2393_s12 }
  0x1e   : > { %2139 = vmatprep.mubr.msk.bf16.mxu1 %vm2469_vm0, %v2468_v1  ;;  %2137 = vmatprep.subr.bf16.mxu1 %v2468_v1  ;;  %p2396_p2 = scmp.lt.s32.totalorder %s2394_s16, %s2388_s8 }
  0x1f   : > { %p2390_p13 = pnand %p2389_p12, %p2553_p4 }
  0x20   : > { %2130 = vmatpush3.bf16.msra.mxu0 %v2343_v6  ;;  %p2397_p3 = por %p2396_p2, %p2395_p1 }
  0x21   : > { %2143 = vmatprep.subr.bf16.mxu0 %v2468_v1  ;;  %2138 = vmatpush3.bf16.msra.mxu1 %v2355_v11  ;;  %p2391_p0 = pneg %p2390_p13 }
  0x22   : > { %2151 = vmatprep.subr.bf16.mxu1 %v2468_v1 }
  0x23   : > { %2132 = vmatmul.mubr.msk.bf16.vlgmr.msra.gmra.mrb[4].mxu0 %vm356_vm1, %v339_v4  ;;  %p2398_p5 = pnand %p2397_p3, %p2391_p0 }
  0x24   : > { %2144 = vmatpush3.bf16.msra.mxu0 %v2344_v8  ;;  %2147 = vmatprep.mubr.msk.bf16.mxu0 %vm2469_vm0, %v2468_v1 }
  0x25   : > { %2145 = vmatprep.subr.bf16.mxu0 %v2468_v1  ;;  %2140 = vmatmul.mubr.msk.bf16.vlgmr.msra.gmra.mrb[4].mxu1 %vm356_vm1, %v339_v4 }
  0x26   : > { %2152 = vmatpush3.bf16.msra.mxu1 %v2356_v14  ;;  %2155 = vmatprep.mubr.msk.bf16.mxu1 %vm2469_vm0, %v2468_v1 }
  0x27   : > { %2153 = vmatprep.subr.bf16.mxu1 %v2468_v1 }
  0x28   : > { %2146 = vmatpush3.bf16.msra.mxu0 %v2345_v10 }
  0x29   : > { %2159 = vmatprep.subr.bf16.mxu0 %v2468_v1 }
  0x2a   : > { %2154 = vmatpush3.bf16.msra.mxu1 %v2357_v20 }
  0x2b   : > { %2148 = vmatmul.mubr.msk.bf16.vlgmr.msra.gmra.mrb[8].mxu0 %vm356_vm1, %v2635_v13  ;;  %2167 = vmatprep.subr.bf16.mxu1 %v2468_v1 }
  0x2c   : > { %2160 = vmatpush3.bf16.msra.mxu0 %v2346_v12  ;;  %2163 = vmatprep.mubr.msk.bf16.mxu0 %vm2469_vm0, %v2468_v1 }
  0x2d   : > { %2161 = vmatprep.subr.bf16.mxu0 %v2468_v1  ;;  %2156 = vmatmul.mubr.msk.bf16.vlgmr.msra.gmra.mrb[8].mxu1 %vm356_vm1, %v2635_v13 }
  0x2e   : > { %2168 = vmatpush3.bf16.msra.mxu1 %v2358_v21  ;;  %2171 = vmatprep.mubr.msk.bf16.mxu1 %vm2469_vm0, %v2468_v1 }
  0x2f   : > { %2169 = vmatprep.subr.bf16.mxu1 %v2468_v1 }
  0x30   : > { %2162 = vmatpush3.bf16.msra.mxu0 %v2347_v15 }
  0x31   : > { %2175 = vmatprep.subr.bf16.mxu0 %v2468_v1 }
  0x32   : > { %2170 = vmatpush3.bf16.msra.mxu1 %v2359_v22 }
  0x33   : > { %2164 = vmatmul.mubr.msk.bf16.vlgmr.msra.gmra.mrb[12].mxu0 %vm356_vm1, %v2635_v13  ;;  %2183 = vmatprep.subr.bf16.mxu1 %v2468_v1 }
  0x34   : > { %2176 = vmatpush3.bf16.msra.mxu0 %v2349_v16  ;;  %2179 = vmatprep.mubr.msk.bf16.mxu0 %vm2469_vm0, %v2468_v1 }
  0x35   : > { %2177 = vmatprep.subr.bf16.mxu0 %v2468_v1  ;;  %2172 = vmatmul.mubr.msk.bf16.vlgmr.msra.gmra.mrb[12].mxu1 %vm356_vm1, %v2635_v13 }
  0x36   : > { %2184 = vmatpush3.bf16.msra.mxu1 %v2360_v23  ;;  %2187 = vmatprep.mubr.msk.bf16.mxu1 %vm2469_vm0, %v2468_v1 }
  0x37   : > { %2185 = vmatprep.subr.bf16.mxu1 %v2468_v1 }
  0x38   : > { %2178 = vmatpush3.bf16.msra.mxu0 %v2351_v17 }
  0x39   : > { %2191 = vmatprep.subr.bf16.mxu0 %v2468_v1 }
  0x3a   : > { %2186 = vmatpush3.bf16.msra.mxu1 %v2361_v24 }
  0x3b   : > { %2180 = vmatmul.mubr.msk.bf16.vlgmr.msra.gmra.mrb[16].mxu0 %vm356_vm1, %v2635_v13  ;;  %2199 = vmatprep.subr.bf16.mxu1 %v2468_v1 }
  0x3c   : > { %2192 = vmatpush3.bf16.msra.mxu0 %v2352_v18  ;;  %2195 = vmatprep.mubr.msk.bf16.mxu0 %vm2469_vm0, %v2468_v1 }
  0x3d   : > { %2193 = vmatprep.subr.bf16.mxu0 %v2468_v1  ;;  %2188 = vmatmul.mubr.msk.bf16.vlgmr.msra.gmra.mrb[16].mxu1 %vm356_vm1, %v2635_v13 }
  0x3e   : > { %2200 = vmatpush3.bf16.msra.mxu1 %v2362_v25  ;;  %2203 = vmatprep.mubr.msk.bf16.mxu1 %vm2469_vm0, %v2468_v1 }
  0x3f   : > { %2201 = vmatprep.subr.bf16.mxu1 %v2468_v1 }
  0x40   : > { %2194 = vmatpush3.bf16.msra.mxu0 %v2354_v19 }
  0x41   : > { %2207 = vmatprep.subr.bf16.mxu0 %v2468_v1 }
  0x42   : > { %2202 = vmatpush3.bf16.msra.mxu1 %v2363_v26 }
  0x43   : > { %2196 = vmatmul.mubr.msk.bf16.vlgmr.msra.gmra.mrb[20].mxu0 %vm356_vm1, %v2635_v13  ;;  %2213 = vmatprep.subr.bf16.mxu1 %v2468_v1 }
  0x44   : > { %2209 = vmatprep.mubr.msk.bf16.mxu0 %vm2469_vm0, %v2468_v1 }
  0x45   : > { %2204 = vmatmul.mubr.msk.bf16.vlgmr.msra.gmra.mrb[20].mxu1 %vm356_vm1, %v2635_v13 }
  0x46   : > { %2215 = vmatprep.mubr.msk.bf16.mxu1 %vm2469_vm0, %v2468_v1 }
  0xee   : > { %v394_v27 = vpop.f32.mrb[0].mxu0  ;;  %v455_v37 = vpop.f32.mrb[0].mxu1 }
  0xef   : > { %v400_v28 = vmul.f32 0.35355338, %v394_v27  ;;  %v2117_v29 = vpop.f32.mrb[1].mxu0  ;;  %v461_v40 = vmul.f32 0.35355338, %v455_v37  ;;  %v2125_v41 = vpop.f32.mrb[1].mxu1 }
  0xf0   : > { %v397_v30 = vpop.f32.mrb[2].mxu0  ;;  %v458_v42 = vpop.f32.mrb[2].mxu1 }
  0xf1   : > { %v401_v31 = vpack.c.bf16 %v400_v28, %v400_v28  ;;  %v2118_v32 = vpop.f32.mrb[3].mxu0  ;;  %v462_v43 = vpack.c.bf16 %v461_v40, %v461_v40  ;;  %v2126_v44 = vpop.f32.mrb[3].mxu1 }
  0xf2   : > { %v2470_v44 = vmov -inf  }
  0xf3   : > { %403 = vst.msk [vmem:[#allocation2] sm:$0xf] %vm402_vm3, %v401_v31  ;;  %464 = vst.msk [vmem:[#allocation2 + $0x4] sm:$0xf] %vm402_vm3, %v462_v43 }
  0xf4   : > { %588 = vst.msk [vmem:[#allocation5] sm:$0xff] %vm587_vm5, %v2470_v44  ;;  %589 = vst.msk [vmem:[#allocation5 + $0x8] sm:$0xff] %vm587_vm5, %v2470_v44 }
  0xf5   : > { %590 = vst.msk [vmem:[#allocation5 + $0x10] sm:$0xff] %vm587_vm5, %v2470_v44  ;;  %591 = vst.msk [vmem:[#allocation5 + $0x18] sm:$0xff] %vm587_vm5, %v2470_v44 }
  0xf6   : > { %v516_v33 = vpop.f32.mrb[4].mxu0 }
  0xf7   : > { %v522_v34 = vmul.f32 0.35355338, %v516_v33  ;;  %v2133_v35 = vpop.f32.mrb[5].mxu0 }
  0xf8   : > { %v519_v36 = vpop.f32.mrb[6].mxu0  ;;  %v577_v49 = vpop.f32.mrb[4].mxu1 }
  0xf9   : > { %v523_v38 = vpack.c.bf16 %v522_v34, %v522_v34  ;;  %v2134_v39 = vpop.f32.mrb[7].mxu0  ;;  %v583_v51 = vmul.f32 0.35355338, %v577_v49  ;;  %v2141_v52 = vpop.f32.mrb[5].mxu1 }
  0xfa   : > { %v580_v53 = vpop.f32.mrb[6].mxu1  ;;  %v1083_v4 = vld [vmem:[#allocation2] sm:$0xf]  ;;  %v1084_v9 = vld [vmem:[#allocation2 + $0x4] sm:$0xf] }
  0xfb   : > { %525 = vst.msk [vmem:[#allocation2 + $0x8] sm:$0xf] %vm402_vm3, %v523_v38  ;;  %v584_v54 = vpack.c.bf16 %v583_v51, %v583_v51  ;;  %v2142_v55 = vpop.f32.mrb[7].mxu1 }
  0xfd   : > { %586 = vst.msk [vmem:[#allocation2 + $0xc] sm:$0xf] %vm402_vm3, %v584_v54 }
  0xfe   : > { %v656_v45 = vpop.f32.mrb[8].mxu0 }
  0xff   : > { %v662_v46 = vpack.c.bf16 %v656_v45, %v656_v45  ;;  %v2149_v47 = vpop.f32.mrb[9].mxu0 }
 0x100   : > { %v659_v48 = vpop.f32.mrb[10].mxu0  ;;  %v715_v20 = vpop.f32.mrb[8].mxu1 }
 0x101   : > { %664 = vst.msk [vmem:[#allocation3] sm:$0xf] %vm402_vm3, %v662_v46  ;;  %v2150_v50 = vpop.f32.mrb[11].mxu0  ;;  %v721_v21 = vpack.c.bf16 %v715_v20, %v715_v20  ;;  %v2157_v22 = vpop.f32.mrb[9].mxu1 }
 0x102   : > { %v1085_v16 = vld [vmem:[#allocation2 + $0x8] sm:$0xf]  ;;  %v718_v23 = vpop.f32.mrb[10].mxu1 }
 0x103   : > { %722 = vst.msk [vmem:[#allocation4] sm:$0xf] %vm402_vm3, %v721_v21  ;;  %v2158_v24 = vpop.f32.mrb[11].mxu1 }
 0x104   : > { %v1086_v19 = vld [vmem:[#allocation2 + $0xc] sm:$0xf] }
 0x106   : > { %v774_v56 = vpop.f32.mrb[12].mxu0 }
 0x107   : > { %v780_v57 = vpack.c.bf16 %v774_v56, %v774_v56  ;;  %v2165_v58 = vpop.f32.mrb[13].mxu0 }
 0x108   : > { %v777_v59 = vpop.f32.mrb[14].mxu0  ;;  %v1087_v60 = vld [vmem:[#allocation3] sm:$0xf]  ;;  %v834_v25 = vpop.f32.mrb[12].mxu1  ;;  %v2471_v58 = vmov 0  }
 0x109   : > { %782 = vst.msk [vmem:[#allocation3 + $0x4] sm:$0xf] %vm402_vm3, %v780_v57  ;;  %v2166_v61 = vpop.f32.mrb[15].mxu0  ;;  %v1096_v62 = vsel %vm596_vm2, %v1087_v60, 0  ;;  %v840_v26 = vpack.c.bf16 %v834_v25, %v834_v25  ;;  %v2173_v27 = vpop.f32.mrb[13].mxu1  ;;  %2338 = vset.pattern.permute.xlu0 %v2471_v58  ;;  %2339 = vset.pattern.permute.xlu1 %v2471_v58 }
 0x10a   : > { %2208 = vmatpush3.bf16.xpose.msra.mxu0 %v1096_v62  ;;  %v837_v28 = vpop.f32.mrb[14].mxu1  ;;  %v1401_v29 = vld [vmem:[#allocation4] sm:$0xf] }
 0x10b   : > { %2219 = vmatprep.subr.bf16.mxu0 %v2468_v1  ;;  %842 = vst.msk [vmem:[#allocation4 + $0x4] sm:$0xf] %vm402_vm3, %v840_v26  ;;  %v2174_v30 = vpop.f32.mrb[15].mxu1  ;;  %v1410_v31 = vsel %vm1408_vm4, %v1401_v29, 0 }
 0x10e   : > { %v894_v63 = vpop.f32.mrb[16].mxu0 }
 0x10f   : > { %v900_v0 = vpack.c.bf16 %v894_v63, %v894_v63  ;;  %v2181_v2 = vpop.f32.mrb[17].mxu0 }
 0x110   : > { %v897_v3 = vpop.f32.mrb[18].mxu0  ;;  %v1088_v5 = vld [vmem:[#allocation3 + $0x4] sm:$0xf]  ;;  %v954_v32 = vpop.f32.mrb[16].mxu1 }
 0x111   : > { %902 = vst.msk [vmem:[#allocation3 + $0x8] sm:$0xf] %vm402_vm3, %v900_v0  ;;  %v2182_v6 = vpop.f32.mrb[19].mxu0  ;;  %2210 = vmatmul.mubr.msk.bf16.vlgmr.msra.gmra.mrb[24].mxu0 %vm596_vm2, %v1083_v4  ;;  %v1142_v7 = vsel %vm596_vm2, %v1088_v5, 0  ;;  %v960_v33 = vpack.c.bf16 %v954_v32, %v954_v32  ;;  %v2189_v34 = vpop.f32.mrb[17].mxu1  ;;  %v1276_v3 = vld [vmem:[#allocation5] sm:$0xff] }
 0x112   : > { %2214 = vmatpush3.bf16.xpose.msra.mxu1 %v1142_v7  ;;  %2221 = vmatprep.mubr.msk.bf16.mxu0 %vm2469_vm0, %v2468_v1  ;;  %v957_v35 = vpop.f32.mrb[18].mxu1  ;;  %v1402_v36 = vld [vmem:[#allocation4 + $0x4] sm:$0xf]  ;;  %v2788_v7 = vld [vmem:[#allocation5 + $0x8] sm:$0xff] }
 0x113   : > { %2225 = vmatprep.subr.bf16.mxu1 %v2468_v1  ;;  %962 = vst.msk [vmem:[#allocation4 + $0x8] sm:$0xf] %vm402_vm3, %v960_v33  ;;  %v2190_v37 = vpop.f32.mrb[19].mxu1  ;;  %v1456_v38 = vsel %vm1408_vm4, %v1402_v36, 0 }
 0x116   : > { %v1014_v8 = vpop.f32.mrb[20].mxu0 }
 0x117   : > { %v1020_v10 = vpack.c.bf16 %v1014_v8, %v1014_v8  ;;  %v2197_v11 = vpop.f32.mrb[21].mxu0 }
 0x118   : > { %v1017_v12 = vpop.f32.mrb[22].mxu0  ;;  %v1089_v13 = vld [vmem:[#allocation3 + $0x8] sm:$0xf]  ;;  %v1074_v39 = vpop.f32.mrb[20].mxu1  ;;  %v2798_v11 = vld [vmem:[#allocation5 + $0x10] sm:$0xff] }
 0x119   : > { %1022 = vst.msk [vmem:[#allocation3 + $0xc] sm:$0xf] %vm402_vm3, %v1020_v10  ;;  %v2198_v14 = vpop.f32.mrb[23].mxu0  ;;  %2216 = vmatmul.mubr.msk.bf16.vlgmr.msra.gmra.mrb[24].mxu1 %vm596_vm2, %v1084_v9  ;;  %v1188_v15 = vsel %vm596_vm2, %v1089_v13, 0  ;;  %v1080_v40 = vpack.c.bf16 %v1074_v39, %v1074_v39  ;;  %v2205_v41 = vpop.f32.mrb[21].mxu1 }
 0x11a   : > { %2220 = vmatpush3.bf16.xpose.msra.mxu0 %v1188_v15  ;;  %2227 = vmatprep.mubr.msk.bf16.mxu1 %vm2469_vm0, %v2468_v1  ;;  %v1077_v42 = vpop.f32.mrb[22].mxu1  ;;  %v1279_v15 = vld [vmem:[#allocation5 + $0x18] sm:$0xff] }
 0x11b   : > { %2231 = vmatprep.subr.bf16.mxu0 %v2468_v1  ;;  %1082 = vst.msk [vmem:[#allocation4 + $0xc] sm:$0xf] %vm402_vm3, %v1080_v40  ;;  %v2206_v43 = vpop.f32.mrb[23].mxu1  ;;  %v1403_v26 = vld [vmem:[#allocation4 + $0x8] sm:$0xf] }
 0x120   : > { %v1090_v17 = vld [vmem:[#allocation3 + $0xc] sm:$0xf] }
 0x121   : > { %2222 = vmatmul.mubr.msk.bf16.vlgmr.msra.gmra.mrb[28].mxu0 %vm596_vm2, %v1085_v16  ;;  %v1234_v18 = vsel %vm596_vm2, %v1090_v17, 0 }
 0x122   : > { %2226 = vmatpush3.bf16.xpose.msra.mxu1 %v1234_v18  ;;  %2233 = vmatprep.mubr.msk.bf16.mxu0 %vm2469_vm0, %v2468_v1  ;;  %v1404_v34 = vld [vmem:[#allocation4 + $0xc] sm:$0xf] }
 0x123   : > { %2237 = vmatprep.subr.bf16.mxu1 %v2468_v1  ;;  %2232 = vmatpush3.bf16.msra.mxu0 %v1410_v31  ;;  %v1502_v31 = vsel %vm1408_vm4, %v1403_v26, 0  ;;  %v1548_v40 = vsel %vm1408_vm4, %v1404_v34, 0 }
 0x124   : > { %2243 = vmatprep.subr.bf16.mxu0 %v2468_v1 }
 0x129   : > { %2228 = vmatmul.mubr.msk.bf16.vlgmr.msra.gmra.mrb[28].mxu1 %vm596_vm2, %v1086_v19 }
 0x12a   : > { %2239 = vmatprep.mubr.msk.bf16.mxu1 %vm2469_vm0, %v2468_v1  ;;  %2238 = vmatpush3.bf16.msra.mxu1 %v1456_v38 }
 0x12b   : > { %2249 = vmatprep.subr.bf16.mxu1 %v2468_v1 }
 0x1e4   : > { %v1132_v45 = vpop.f32.mrb[24].mxu0 }
 0x1e5   : > { %v2211_v46 = vpop.f32.mrb[25].mxu0  ;;  %v1280_v47 = vsel %vm596_vm2, %v1132_v45, -inf }
 0x1e6   : > { %1281 = vmax.xlane.f32.xlu0 %v1280_v47  ;;  %v1135_v48 = vpop.f32.mrb[26].mxu0 }
 0x1e7   : > { %v2212_v49 = vpop.f32.mrb[27].mxu0 }
 0x1ec   : > { %v1178_v50 = vpop.f32.mrb[24].mxu1 }
 0x1ed   : > { %v1283_v51 = vsel %vm596_vm2, %v1178_v50, -inf  ;;  %v2217_v52 = vpop.f32.mrb[25].mxu1 }
 0x1ee   : > { %1284 = vmax.xlane.f32.xlu0 %v1283_v51  ;;  %v1181_v53 = vpop.f32.mrb[26].mxu1 }
 0x1ef   : > { %v2218_v54 = vpop.f32.mrb[27].mxu1 }
 0x1f4   : > { %v1224_v55 = vpop.f32.mrb[28].mxu0 }
 0x1f5   : > { %v2223_v56 = vpop.f32.mrb[29].mxu0  ;;  %v1286_v57 = vsel %vm596_vm2, %v1224_v55, -inf }
 0x1f6   : > { %1287 = vmax.xlane.f32.xlu1 %v1286_v57  ;;  %v1227_v59 = vpop.f32.mrb[30].mxu0 }
 0x1f7   : > { %v2224_v60 = vpop.f32.mrb[31].mxu0  ;;  %v1341_v59 = vld [vmem:[#allocation6 + $0x8] sm:$0xff] }
 0x1fc   : > { %v1270_v61 = vpop.f32.mrb[28].mxu1 }
 0x1fd   : > { %v2229_v62 = vpop.f32.mrb[29].mxu1  ;;  %v1289_v63 = vsel %vm596_vm2, %v1270_v61, -inf }
 0x1fe   : > { %v1273_v0 = vpop.f32.mrb[30].mxu1  ;;  %1290 = vmax.xlane.f32.xlu1 %v1289_v63 }
 0x1ff   : > { %v2230_v2 = vpop.f32.mrb[31].mxu1  ;;  %v1342_v0 = vld [vmem:[#allocation6 + $0x10] sm:$0xff] }
 0x273   : > { %v1282_v4 = vpop.xlane.xlu0 %1281 }
 0x274   : > { %v1292_v5 = vmax.f32 %v1276_v3, %v1282_v4 }
 0x276   : > { %v1296_v6 = vsub.f32 %v1276_v3, %v1292_v5  ;;  %1598 = vst.msk [vmem:[#allocation5] sm:$0xff] %vm587_vm5, %v1292_v5  ;;  %1310 = vperm.xlu0 %2338, %v1292_v5  }
 0x278   : > { %v1300_v35 = vmul.f32 1.442695, %v1296_v6  ;;  %v1343_v6 = vld [vmem:[#allocation6 + $0x18] sm:$0xff] }
 0x27b   : > { %v1285_v8 = vpop.xlane.xlu0 %1284 }
 0x27c   : > { %v2791_v9 = vmax.f32 %v2788_v7, %v1285_v8  ;;  %v1645_v8 = vld [vmem:[%s2927_s5] sm:$0xf] }
 0x27e   : > { %v1297_v10 = vsub.f32 %v2788_v7, %v2791_v9  ;;  %1599 = vst.msk [vmem:[#allocation5 + $0x8] sm:$0xff] %vm587_vm5, %v2791_v9  ;;  %1315 = vperm.xlu1 %2339, %v2791_v9  }
 0x280   : > { %v1302_v49 = vmul.f32 1.442695, %v1297_v10  ;;  %v1698_v10 = vsel %vm1408_vm4, %v1645_v8, 0 }
 0x283   : > { %v1288_v12 = vpop.xlane.xlu1 %1287 }
 0x284   : > { %v2801_v13 = vmax.f32 %v2798_v11, %v1288_v12 }
 0x286   : > { %v1298_v14 = vsub.f32 %v2798_v11, %v2801_v13  ;;  %1600 = vst.msk [vmem:[#allocation5 + $0x10] sm:$0xff] %vm587_vm5, %v2801_v13  ;;  %1320 = vperm.xlu1 %2339, %v2801_v13  }
 0x28b   : > { %v1291_v16 = vpop.xlane.xlu1 %1290 }
 0x28c   : > { %v1295_v17 = vmax.f32 %v1279_v15, %v1291_v16 }
 0x28e   : > { %v1299_v18 = vsub.f32 %v1279_v15, %v1295_v17  ;;  %1601 = vst.msk [vmem:[#allocation5 + $0x18] sm:$0xff] %vm587_vm5, %v1295_v17  ;;  %1325 = vperm.xlu1 %2339, %v1295_v17   ;;  %v2039_v15 = vld [vmem:[%s2927_s5 + $0x4] sm:$0xf] }
 0x28f   : > { %v1652_v16 = vsel %vm1408_vm4, %v2039_v15, 0 }
 0x290   : > { %v1306_v51 = vmul.f32 1.442695, %v1299_v18 }
 0x2f5   : > { %v1311_v19 = vpop.permute.xlu0 %1310 }
 0x2f6   : > { %v1328_v20 = vsub.f32 %v1132_v45, %v1311_v19 }
 0x2f8   : > { %v1332_v21 = vmul.f32 1.442695, %v1328_v20  ;;  %v1369_v20 = vld [vmem:[#allocation7] sm:$0xff] }
 0x2fa   : > { %2364 = vpow2.f32 %v1332_v21 }
 0x2fd   : > { %v1316_v22 = vpop.permute.xlu1 %1315 }
 0x2fe   : > { %v1329_v23 = vsub.f32 %v1178_v50, %v1316_v22  ;;  %v1304_v50 = vmul.f32 1.442695, %v1298_v14 }
 0x300   : > { %v1334_v24 = vmul.f32 1.442695, %v1329_v23 }
 0x302   : > { %2366 = vpow2.f32 %v1334_v24 }
 0x304   : > { %v2365_v25 = vpop.eup %2364 }
 0x305   : > { %v1321_v27 = vpop.permute.xlu1 %1320  ;;  %v1348_v28 = vsel %vm596_vm2, %v2365_v25, 0.0  ;;  %v1397_v29 = vpack.c.bf16 %v2365_v25, %v2365_v25 }
 0x306   : > { %v1330_v30 = vsub.f32 %v1224_v55, %v1321_v27  ;;  %1349 = vadd.xlane.f32.xlu0 %v1348_v28  ;;  %v1340_v55 = vld [vmem:[#allocation6] sm:$0xff]  ;;  %v1370_v28 = vld [vmem:[#allocation7 + $0x8] sm:$0xff] }
 0x307   : > { %2234 = vmatmul.mubr.msk.bf16.vlgmr.msra.gmra.mrb[32].mxu0 %vm596_vm2, %v1397_v29 }
 0x308   : > { %v1336_v32 = vmul.f32 1.442695, %v1330_v30  ;;  %2244 = vmatpush3.bf16.msra.mxu0 %v1502_v31  ;;  %2245 = vmatprep.mubr.msk.bf16.mxu0 %vm2469_vm0, %v2468_v1 }
 0x309   : > { %2255 = vmatprep.subr.bf16.mxu0 %v2468_v1 }
 0x30a   : > { %2368 = vpow2.f32 %v1336_v32 }
 0x30b   : > { %2370 = vpow2.f32 %v1300_v35 }
 0x30c   : > { %v2367_v33 = vpop.eup %2366 }
 0x30d   : > { %v1326_v36 = vpop.permute.xlu1 %1325  ;;  %v1351_v37 = vsel %vm596_vm2, %v2367_v33, 0.0  ;;  %v1398_v38 = vpack.c.bf16 %v2367_v33, %v2367_v33 }
 0x30e   : > { %v1331_v39 = vsub.f32 %v1270_v61, %v1326_v36  ;;  %1352 = vadd.xlane.f32.xlu1 %v1351_v37  ;;  %v1371_v36 = vld [vmem:[#allocation7 + $0x10] sm:$0xff] }
 0x30f   : > { %2240 = vmatmul.mubr.msk.bf16.vlgmr.msra.gmra.mrb[32].mxu1 %vm596_vm2, %v1398_v38 }
 0x310   : > { %v1338_v41 = vmul.f32 1.442695, %v1331_v39  ;;  %2250 = vmatpush3.bf16.msra.mxu1 %v1548_v40  ;;  %2251 = vmatprep.mubr.msk.bf16.mxu1 %vm2469_vm0, %v2468_v1 }
 0x311   : > { %2261 = vmatprep.subr.bf16.mxu1 %v2468_v1 }
 0x312   : > { %2372 = vpow2.f32 %v1338_v41 }
 0x313   : > { %2374 = vpow2.f32 %v1302_v49 }
 0x314   : > { %v2369_v42 = vpop.eup %2368  ;;  %2376 = vpow2.f32 %v1304_v50 }
 0x315   : > { %v1354_v43 = vsel %vm596_vm2, %v2369_v42, 0.0  ;;  %v1399_v44 = vpack.c.bf16 %v2369_v42, %v2369_v42  ;;  %v2371_v45 = vpop.eup %2370  ;;  %2378 = vpow2.f32 %v1306_v51 }
 0x316   : > { %1355 = vadd.xlane.f32.xlu1 %v1354_v43  ;;  %v1344_v56 = vmul.f32 %v2371_v45, %v1340_v55 }
 0x317   : > { %2246 = vmatmul.mubr.msk.bf16.vlgmr.msra.gmra.mrb[36].mxu0 %vm596_vm2, %v1399_v44  ;;  %v1372_v44 = vld [vmem:[#allocation7 + $0x18] sm:$0xff] }
 0x318   : > { %2257 = vmatprep.mubr.msk.bf16.mxu0 %vm2469_vm0, %v2468_v1  ;;  %2256 = vmatpush3.bf16.msra.mxu0 %v1652_v16 }
 0x319   : > { %2267 = vmatprep.subr.bf16.mxu0 %v2468_v1 }
 0x31c   : > { %v2373_v46 = vpop.eup %2372  ;;  %1375 = vperm.xlu0 %2338, %v2371_v45  }
 0x31d   : > { %v1357_v47 = vsel %vm596_vm2, %v2373_v46, 0.0  ;;  %v1400_v48 = vpack.c.bf16 %v2373_v46, %v2373_v46  ;;  %v2375_v52 = vpop.eup %2374 }
 0x31e   : > { %1358 = vadd.xlane.f32.xlu1 %v1357_v47  ;;  %v2377_v53 = vpop.eup %2376  ;;  %v1345_v60 = vmul.f32 %v2375_v52, %v1341_v59 }
 0x31f   : > { %2252 = vmatmul.mubr.msk.bf16.vlgmr.msra.gmra.mrb[36].mxu1 %vm596_vm2, %v1400_v48  ;;  %v2379_v54 = vpop.eup %2378  ;;  %v1346_v2 = vmul.f32 %v2377_v53, %v1342_v0 }
 0x320   : > { %2263 = vmatprep.mubr.msk.bf16.mxu1 %vm2469_vm0, %v2468_v1  ;;  %v1347_v9 = vmul.f32 %v2379_v54, %v1343_v6  ;;  %2262 = vmatpush3.bf16.msra.mxu1 %v1698_v10 }
 0x321   : > { %2273 = vmatprep.subr.bf16.mxu1 %v2468_v1 }
 0x32f   : > { %1380 = vperm.xlu1 %2339, %v2375_v52  }
 0x333   : > { %1385 = vperm.xlu1 %2339, %v2377_v53  }
 0x337   : > { %1390 = vperm.xlu1 %2339, %v2379_v54   ;;  %v2044_v54 = vld [vmem:[%s2927_s5 + $0xc] sm:$0xf] }
 0x393   : > { %v1350_v57 = vpop.xlane.xlu0 %1349 }
 0x394   : > { %v1360_v58 = vadd.f32 %v1350_v57, %v1344_v56  ;;  %v1795_v57 = vsel %vm1408_vm4, %v2044_v54, 0 }
 0x396   : > { %1365 = vst.msk [vmem:[#allocation6] sm:$0xff] %vm587_vm5, %v1360_v58 }
 0x39b   : > { %v1353_v61 = vpop.xlane.xlu1 %1352  ;;  %v1376_v21 = vpop.permute.xlu0 %1375 }
 0x39c   : > { %v1361_v62 = vadd.f32 %v1353_v61, %v1345_v60  ;;  %v1393_v22 = vmul.f32 %v1376_v21, %v1369_v20  ;;  %v2042_v60 = vld [vmem:[%s2927_s5 + $0x8] sm:$0xf] }
 0x39d   : > { %v1605_v63 = vld [vmem:[#allocation6] sm:$0xff] }
 0x39e   : > { %1366 = vst.msk [vmem:[#allocation6 + $0x8] sm:$0xff] %vm587_vm5, %v1361_v62  ;;  %2380 = vrcp.f32 %v1605_v63  ;;  %v1746_v63 = vsel %vm1408_vm4, %v2042_v60, 0 }
 0x3a3   : > { %v1356_v3 = vpop.xlane.xlu1 %1355 }
 0x3a4   : > { %v1362_v4 = vadd.f32 %v1356_v3, %v1346_v2 }
 0x3a5   : > { %v1606_v5 = vld [vmem:[#allocation6 + $0x8] sm:$0xff] }
 0x3a6   : > { %1367 = vst.msk [vmem:[#allocation6 + $0x10] sm:$0xff] %vm587_vm5, %v1362_v4  ;;  %2382 = vrcp.f32 %v1606_v5 }
 0x3a8   : > { %v2381_v7 = vpop.eup %2380 }
 0x3a9   : > { %1619 = vperm.xlu0 %2338, %v2381_v7  }
 0x3ab   : > { %v1359_v11 = vpop.xlane.xlu1 %1358 }
 0x3ac   : > { %v1363_v12 = vadd.f32 %v1359_v11, %v1347_v9 }
 0x3ad   : > { %v1607_v13 = vld [vmem:[#allocation6 + $0x10] sm:$0xff] }
 0x3ae   : > { %1368 = vst.msk [vmem:[#allocation6 + $0x18] sm:$0xff] %vm587_vm5, %v1363_v12  ;;  %2384 = vrcp.f32 %v1607_v13 }
 0x3af   : > { %v1381_v29 = vpop.permute.xlu1 %1380 }
 0x3b0   : > { %v2383_v14 = vpop.eup %2382  ;;  %v1394_v30 = vmul.f32 %v1381_v29, %v1370_v28 }
 0x3b1   : > { %1624 = vperm.xlu1 %2339, %v2383_v14  }
 0x3b3   : > { %v1386_v37 = vpop.permute.xlu1 %1385 }
 0x3b4   : > { %v1395_v38 = vmul.f32 %v1386_v37, %v1371_v36 }
 0x3b5   : > { %v1608_v17 = vld [vmem:[#allocation6 + $0x18] sm:$0xff] }
 0x3b6   : > { %2386 = vrcp.f32 %v1608_v17 }
 0x3b7   : > { %v1391_v45 = vpop.permute.xlu1 %1390 }
 0x3b8   : > { %v2385_v18 = vpop.eup %2384  ;;  %v1396_v46 = vmul.f32 %v1391_v45, %v1372_v44 }
 0x3b9   : > { %1629 = vperm.xlu1 %2339, %v2385_v18  }
 0x3c0   : > { %v2387_v19 = vpop.eup %2386 }
 0x3c1   : > { %1634 = vperm.xlu0 %2338, %v2387_v19  }
 0x3da   : > { %v1446_v23 = vpop.f32.mrb[32].mxu0 }
 0x3db   : > { %v1590_v24 = vadd.f32 %v1446_v23, %v1393_v22  ;;  %v2235_v25 = vpop.f32.mrb[33].mxu0  ;;  %v2046_v23 = vld [vmem:[%s2928_s6] ss:$0 sm:$0xff] }
 0x3dc   : > { %v1449_v26 = vpop.f32.mrb[34].mxu0 }
 0x3dd   : > { %1594 = vst.msk [vmem:[#allocation7] sm:$0xff] %vm596_vm2, %v1590_v24  ;;  %v2236_v27 = vpop.f32.mrb[35].mxu0 }
 0x3e2   : > { %v1492_v31 = vpop.f32.mrb[32].mxu1 }
 0x3e3   : > { %v1591_v32 = vadd.f32 %v1492_v31, %v1394_v30  ;;  %v2241_v33 = vpop.f32.mrb[33].mxu1 }
 0x3e4   : > { %v1495_v34 = vpop.f32.mrb[34].mxu1  ;;  %v1613_v53 = vld [vmem:[#allocation7] sm:$0xff] }
 0x3e5   : > { %1595 = vst.msk [vmem:[#allocation7 + $0x8] sm:$0xff] %vm596_vm2, %v1591_v32  ;;  %v2242_v35 = vpop.f32.mrb[35].mxu1 }
 0x3ea   : > { %v1538_v39 = vpop.f32.mrb[36].mxu0 }
 0x3eb   : > { %v1592_v40 = vadd.f32 %v1538_v39, %v1395_v38  ;;  %v2247_v41 = vpop.f32.mrb[37].mxu0 }
 0x3ec   : > { %v1541_v42 = vpop.f32.mrb[38].mxu0  ;;  %v1614_v58 = vld [vmem:[#allocation7 + $0x8] sm:$0xff] }
 0x3ed   : > { %1596 = vst.msk [vmem:[#allocation7 + $0x10] sm:$0xff] %vm596_vm2, %v1592_v40  ;;  %v2248_v43 = vpop.f32.mrb[39].mxu0 }
 0x3f2   : > { %v1584_v47 = vpop.f32.mrb[36].mxu1 }
 0x3f3   : > { %v1593_v48 = vadd.f32 %v1584_v47, %v1396_v46  ;;  %v2253_v49 = vpop.f32.mrb[37].mxu1 }
 0x3f4   : > { %v1587_v50 = vpop.f32.mrb[38].mxu1  ;;  %v1615_v2 = vld [vmem:[#allocation7 + $0x10] sm:$0xff] }
 0x3f5   : > { %1597 = vst.msk [vmem:[#allocation7 + $0x18] sm:$0xff] %vm596_vm2, %v1593_v48  ;;  %v2254_v51 = vpop.f32.mrb[39].mxu1 }
 0x3fc   : > { %v1616_v6 = vld [vmem:[#allocation7 + $0x18] sm:$0xff] }
 0x428   : > { %v1620_v52 = vpop.permute.xlu0 %1619 }
 0x429   : > { %v1637_v55 = vmul.f32 %v1620_v52, %v1613_v53 }
 0x42b   : > { %v1641_v56 = vpack.c.bf16 %v1637_v55, %v1637_v55 }
 0x42d   : > { %2264 = vmatmul.mubr.msk.bf16.vlgmr.msra.gmra.mrb[40].mxu1 %vm596_vm2, %v1641_v56 }
 0x42e   : > { %2274 = vmatpush3.bf16.msra.mxu1 %v1795_v57  ;;  %2275 = vmatprep.mubr.msk.bf16.mxu1 %vm2469_vm0, %v2468_v1 }
 0x430   : > { %v1625_v59 = vpop.permute.xlu1 %1624 }
 0x431   : > { %v1638_v61 = vmul.f32 %v1625_v59, %v1614_v58 }
 0x433   : > { %v1642_v62 = vpack.c.bf16 %v1638_v61, %v1638_v61 }
 0x435   : > { %2258 = vmatmul.mubr.msk.bf16.vlgmr.msra.gmra.mrb[40].mxu0 %vm596_vm2, %v1642_v62 }
 0x436   : > { %2268 = vmatpush3.bf16.msra.mxu0 %v1746_v63  ;;  %2269 = vmatprep.mubr.msk.bf16.mxu0 %vm2469_vm0, %v2468_v1 }
 0x438   : > { %v1630_v0 = vpop.permute.xlu1 %1629 }
 0x439   : > { %v1639_v3 = vmul.f32 %v1630_v0, %v1615_v2 }
 0x43b   : > { %v1643_v4 = vpack.c.bf16 %v1639_v3, %v1639_v3 }
 0x43d   : > { %2270 = vmatmul.mubr.msk.bf16.vlgmr.msra.gmra.mrb[44].mxu0 %vm596_vm2, %v1643_v4 }
 0x440   : > { %v1635_v5 = vpop.permute.xlu0 %1634 }
 0x441   : > { %v1640_v7 = vmul.f32 %v1635_v5, %v1616_v6 }
 0x443   : > { %v1644_v8 = vpack.c.bf16 %v1640_v7, %v1640_v7 }
 0x445   : > { %2276 = vmatmul.mubr.msk.bf16.vlgmr.msra.gmra.mrb[44].mxu1 %vm596_vm2, %v1644_v8 }
 0x500   : > { %v1734_v9 = vpop.f32.mrb[40].mxu1 }
 0x501   : > { %v2265_v10 = vpop.f32.mrb[41].mxu1 }
 0x502   : > { %v1737_v11 = vpop.f32.mrb[42].mxu1 }
 0x503   : > { %v2266_v12 = vpop.f32.mrb[43].mxu1 }
 0x508   : > { %v1688_v13 = vpop.f32.mrb[40].mxu0 }
 0x509   : > { %v1735_v1 = vadd.f32 %v1734_v9, %v1688_v13  ;;  %v2259_v14 = vpop.f32.mrb[41].mxu0 }
 0x50a   : > { %v1691_v15 = vpop.f32.mrb[42].mxu0 }
 0x50b   : > { %v2260_v16 = vpop.f32.mrb[43].mxu0 }
 0x510   : > { %v1782_v17 = vpop.f32.mrb[44].mxu0 }
 0x511   : > { %v1788_v18 = vadd.f32 %v1782_v17, %v1735_v1  ;;  %v2271_v19 = vpop.f32.mrb[45].mxu0 }
 0x512   : > { %v1785_v20 = vpop.f32.mrb[46].mxu0 }
 0x513   : > { %v2272_v21 = vpop.f32.mrb[47].mxu0 }
 0x518   : > { %v1831_v22 = vpop.f32.mrb[44].mxu1 }
 0x519   : > { %v1837_v24 = vadd.f32 %v1831_v22, %v1788_v18  ;;  %v2277_v25 = vpop.f32.mrb[45].mxu1 }
 0x51a   : > { %v1834_v26 = vpop.f32.mrb[46].mxu1 }
 0x51b   : > { %v1845_v27 = vadd.f32 %v2046_v23, %v1837_v24  ;;  %v2278_v28 = vpop.f32.mrb[47].mxu1 }
 0x51d   : > { %1846 = vst.msk [vmem:[%s319_s20] sm:$0xff] %vm356_vm1, %v1845_v27 }
 0x51e   : > { %2401 = shalt.err (!%p2398_p5)
}
 0x51f   : > { %s2402_s15 = scalar_lea.hbm %s2874_s30, 128  ;;  %s2406_s19 = scalar_lea.hbm %s2929_s7, 256 }
 0x520   : > { %p2403_p6 = scmp.ne.s32.totalorder %s2874_s30, %s2402_s15  ;;  %p2407_p10 = scmp.lt.u32.totalorder %s2874_s30, %s2929_s7 }
 0x521   : > { %p2408_p11 = scmp.lt.u32.totalorder %s2406_s19, %s2402_s15  ;;  %p2410_p13 = scmp.lt.u32.totalorder %s2402_s15, %s2874_s30 }
 0x522   : > { %p2404_p7 = pnand %p2403_p6, %p2553_p4 }
 0x523   : > { %p2409_p12 = por %p2408_p11, %p2407_p10 }
 0x524   : > { %p2405_p9 = pneg %p2404_p7 }
 0x525   : > { %p2411_p0 = por %p2410_p13, %p2409_p12 }
 0x527   : > { %p2412_p1 = pnand %p2411_p0, %p2405_p9 }
 0x529   : > { %2415 = shalt.err (!%p2412_p1)
}
 0x52a   : > { %2279 = dma.vmem_to_hbm [thread:$0]  (%p2553_p4), %s2876_s21, 128, %s2874_s30, %s1848_s27  }
 0x52b PF: > { %p2285_p2 = scmp.ge.s32.totalorder %s2466_s29, 2  ;;  %s1874_s23 = sand.u32 1, %s2446_s24  }
 0x52c   : > { %s1875_s8 = scalar_lea.sflag [#allocation9], %s1874_s23 }
 0x52d   : > { %p2282_p3 = pnand %p2285_p2, %p2560_p8 }
 0x52f   : > { %2441 = dma.done.wait (!%p2282_p3), %s1875_s8, 128  }
 0x530   : > { %2443 = vsyncadd (!%p2282_p3), %s1875_s8, 4294967168  ;;  %s20_s29 = sadd.s32 1, %s2466_s29   ;;  %s2932_s24 = smov %s2450_s25 }
 0x531   : > { %p17_p5 = scmp.ge.s32.totalorder %s20_s29, 4   ;;  %s2933_s25 = smov %s2454_s26 }
 0x532   : > { %s2934_s26 = smov %s2566_s14  ;;  %s2935_s27 = smov %s2462_s28 }
 0x533   : > { %s2936_s28 = smov %s2938_s9  ;;  %19 = sbr.rel (!%p17_p5) target bundleno = 4 (0x4), region = 115 }
 0x53a   :  { %1880 = vsyncpa [#allocation9], 1 }
 0x53b   :  { %1882 = vsyncpa [#allocation9 + $0x1], 1 }

</bundles_post_ra>
